<compile_context>
chip_gen: v5e
topology: v5e:2x2
jax: 0.10.0
libtpu: 0.0.40
codegen_flags: <defaults>
</compile_context>

<pallas_src>
import numpy as np
import jax
import jax.numpy as jnp
from jax.experimental import pallas as pl
from jax.experimental.pallas import tpu as pltpu

EPS = 1e-5            # InstanceNorm2d eps
LRELU_SLOPE = 0.01    # LeakyReLU default negative_slope


# --------------------------------------------------------------------------
# Fully fused per-stage Pallas kernel
# --------------------------------------------------------------------------

def _stage_kernel(lres_ref, skip_ref, p2_ref, t_ref, brow_ref, mx_ref, ms_ref,
                  m2_ref, s02_ref, sk_ref, q_ref, aff_ref, out_ref):
    """One decoder stage for one batch element, everything in VMEM.

    lres_ref : (1, Hl, Lin)  low-res input, fused layout Lin = Wl * C_below
    skip_ref : (1, H,  L)    skip connection,  fused layout L   = W  * C_skip
    p2_ref   : (2, H, Hl)    even/odd output-row expansion matrices (0/1)
    t_ref    : (2, Lin, L)   transp-conv banded weights (per output-row parity)
    brow_ref : (1, L)        transp-conv bias, tiled over W
    mx_ref   : (3, L, L)     conv1 banded weights, x half of the concat, per dy
    ms_ref   : (3, L, L)     conv1 banded weights, skip half, per dy
    m2_ref   : (3, L, L)     conv2 banded weights, per dy
    s02_ref  : (2, H, H)     row-shift matrices for dy = 0 and dy = 2 (dy=1 is identity)
    sk_ref   : (2, L, L)     1x1 shortcut conv, block-diagonal, x half / skip half
    q_ref    : (L, L)        per-channel lane-averaging matrix (InstanceNorm stats)
    aff_ref  : (6, L)        IN affine rows [g1, b1, g2, b2, g3, b3], tiled over W
    out_ref  : (1, H, L)     stage output, lane-dense (L = 128 here)
    """
    f32 = jnp.float32

    def dot(a, b):
        return jnp.dot(a, b, preferred_element_type=f32)

    lres = lres_ref[0]              # (Hl, Lin)
    skip = skip_ref[0]              # (H, L)
    aff = aff_ref[...]              # (6, L)

    # ---- ConvTranspose2d(C_below -> C_skip, k=2, s=2) -------------------
    a_even = dot(lres, t_ref[0])                        # output rows 2y
    a_odd = dot(lres, t_ref[1])                         # output rows 2y+1
    x = dot(p2_ref[0], a_even) + dot(p2_ref[1], a_odd) + brow_ref[...]   # (H, L)

    def inorm(y, g_row, b_row):
        # One-pass InstanceNorm: per-sample/per-channel stats over H*W.
        # q_ref averages all lanes that carry the same channel (value is
        # replicated across those lanes, so everything stays 128-wide).
        mean_b = jnp.sum(dot(y, q_ref[...]), axis=0, keepdims=True)      # (1, L)
        ex2_b = jnp.sum(dot(y * y, q_ref[...]), axis=0, keepdims=True)   # (1, L)
        var_b = jnp.maximum(ex2_b - mean_b * mean_b, 0.0)
        return (y - mean_b) * (jax.lax.rsqrt(var_b + EPS) * g_row) + b_row

    def lrelu(v):
        return jnp.where(v >= 0, v, LRELU_SLOPE * v)

    def conv3x3(pairs):
        # pairs: ((activation (H, L), banded weight ref (3, L, L)), ...)
        # taps[dy] = contraction over (dx, cin) at each input row; the dy tap is
        # then applied with a tiny 0/1 row-shift matmul (zero-padding included).
        taps = [sum(dot(a, w[dy]) for a, w in pairs) for dy in range(3)]
        return taps[1] + dot(s02_ref[0], taps[0]) + dot(s02_ref[1], taps[2])

    # ---- residual block, main path: conv3x3 -> IN -> LReLU -> conv3x3 -> IN
    # (conv biases omitted: exactly cancelled by the InstanceNorm mean subtraction)
    h = conv3x3(((x, mx_ref), (skip, ms_ref)))          # concat folded into split weights
    h = lrelu(inorm(h, aff[0:1], aff[1:2]))
    h = conv3x3(((h, m2_ref),))
    h = inorm(h, aff[2:3], aff[3:4])

    # ---- residual block, shortcut: 1x1 conv (no bias) -> IN; add; LReLU
    r = dot(x, sk_ref[0]) + dot(skip, sk_ref[1])
    r = inorm(r, aff[4:5], aff[5:6])

    out_ref[0] = lrelu(h + r)


def _run_stage(lres, skip, ops):
    """lres: (B, Hl, Lin), skip: (B, H, L) fused layout -> (B, H, L)."""
    B, Hl, Lin = lres.shape
    _, H, L = skip.shape

    def full(shape):
        return pl.BlockSpec(shape, lambda n, _s=len(shape): (0,) * _s)

    return pl.pallas_call(
        _stage_kernel,
        out_shape=jax.ShapeDtypeStruct((B, H, L), jnp.float32),
        grid=(B,),
        in_specs=[
            pl.BlockSpec((1, Hl, Lin), lambda n: (n, 0, 0)),   # lres
            pl.BlockSpec((1, H, L), lambda n: (n, 0, 0)),      # skip
            full((2, H, Hl)),       # P2
            full((2, Lin, L)),      # T
            full((1, L)),           # brow
            full((3, L, L)),        # MX
            full((3, L, L)),        # MS
            full((3, L, L)),        # M2
            full((2, H, H)),        # S02
            full((2, L, L)),        # SK
            full((L, L)),           # Q
            full((6, L)),           # aff
        ],
        out_specs=pl.BlockSpec((1, H, L), lambda n: (n, 0, 0)),
        compiler_params=pltpu.CompilerParams(
            dimension_semantics=("parallel",)),    # B=2 -> one batch element per TC on v7x
    )(lres, skip, ops['P2'], ops['T'], ops['brow'], ops['MX'], ops['MS'],
      ops['M2'], ops['S02'], ops['SK'], ops['Q'], ops['aff'])


# --------------------------------------------------------------------------
# Host-side (one-time) weight repacking: PyTorch layouts -> banded matrices
# --------------------------------------------------------------------------

def _prepare_stage(p, H, W, Cs):
    """Repack one stage's PyTorch-layout weights into the fused-lane operands."""
    Hl, Wl = H // 2, W // 2
    tw = np.asarray(p['tconv_w'], np.float32)      # (Cb, Cs, 2, 2)
    tb = np.asarray(p['tconv_b'], np.float32)      # (Cs,)
    w1 = np.asarray(p['conv1_w'], np.float32)      # (Cs, 2Cs, 3, 3)
    w2 = np.asarray(p['conv2_w'], np.float32)      # (Cs, Cs, 3, 3)
    ws = np.asarray(p['skip_w'], np.float32)       # (Cs, 2Cs)
    Cb = tw.shape[0]
    L = W * Cs
    Lin = Wl * Cb

    # ConvTranspose2d(k=2, s=2): one banded (Lin, L) matrix per output-row parity.
    T = np.zeros((2, Lin, L), np.float32)
    for dy in range(2):
        for dx in range(2):
            blk = tw[:, :, dy, dx]                 # [ci, co]
            for xi in range(Wl):
                xo = 2 * xi + dx
                T[dy, xi * Cb:(xi + 1) * Cb, xo * Cs:(xo + 1) * Cs] = blk
    brow = np.tile(tb, W)[None, :]                 # (1, L): lane x*Cs+co -> tb[co]

    # Even/odd output-row expansion (sub-pixel scatter in the row direction).
    P2 = np.zeros((2, H, Hl), np.float32)
    for m in range(Hl):
        P2[0, 2 * m, m] = 1.0
        P2[1, 2 * m + 1, m] = 1.0

    # 3x3 convs: width tap (dx) + input channels folded into banded (L, L) matrices,
    # one per height tap dy; x-direction zero padding is encoded by the band limits.
    def conv_band(w, ci_lo, ci_hi, dy):
        M = np.zeros((L, L), np.float32)
        for xo in range(W):
            for dx in range(3):
                xw = xo + dx - 1
                if 0 <= xw < W:
                    M[xw * Cs:(xw + 1) * Cs, xo * Cs:(xo + 1) * Cs] = \
                        w[:, ci_lo:ci_hi, dy, dx].T          # [ci, co]
        return M

    MX = np.stack([conv_band(w1, 0, Cs, dy) for dy in range(3)])
    MS = np.stack([conv_band(w1, Cs, 2 * Cs, dy) for dy in range(3)])
    M2 = np.stack([conv_band(w2, 0, Cs, dy) for dy in range(3)])

    # Row-shift matrices for the dy=0 / dy=2 height taps (y-direction zero padding).
    S02 = np.zeros((2, H, H), np.float32)
    for y in range(H):
        if y - 1 >= 0:
            S02[0, y, y - 1] = 1.0
        if y + 1 < H:
            S02[1, y, y + 1] = 1.0

    # 1x1 shortcut conv (no bias): block-diagonal, split into x half / skip half.
    def diag_band(wslice):                         # (Cs, Cs) [co, ci]
        M = np.zeros((L, L), np.float32)
        for xo in range(W):
            M[xo * Cs:(xo + 1) * Cs, xo * Cs:(xo + 1) * Cs] = wslice.T
        return M
    SK = np.stack([diag_band(ws[:, 0:Cs]), diag_band(ws[:, Cs:2 * Cs])])

    # Channel-group averaging matrix for the InstanceNorm statistics.
    Q = np.zeros((L, L), np.float32)
    for c in range(Cs):
        idx = np.arange(W) * Cs + c
        Q[np.ix_(idx, idx)] = 1.0 / (H * W)

    aff = np.stack([np.tile(np.asarray(p[k], np.float32), W)
                    for k in ('in1_g', 'in1_b', 'in2_g', 'in2_b',
                              'in3_g', 'in3_b')])  # (6, L)

    j = jnp.asarray
    return dict(T=j(T), brow=j(brow), P2=j(P2), MX=j(MX), MS=j(MS), M2=j(M2),
                S02=j(S02), SK=j(SK), Q=j(Q), aff=j(aff))


def prepare_decoder_operands(params, skip_shapes_nchw):
    """Per-stage kernel operands; call once after parameter creation/loading."""
    ops = []
    for s, p in enumerate(params):
        _, Cs, H, W = skip_shapes_nchw[-(s + 2)]
        ops.append(_prepare_stage(p, H, W, Cs))
    return ops


# --------------------------------------------------------------------------
# Decoder forward + deterministic parameter init (PyTorch-native layouts)
# --------------------------------------------------------------------------

def init_decoder_params(key, output_channels, strides):
    """One residual block per stage (n_conv_per_stage = 1).
    conv1/conv2 biases are not stored: a per-channel bias right before
    InstanceNorm is exactly cancelled by the mean subtraction."""
    params = []
    n_stages = len(output_channels)
    for s in range(1, n_stages):
        c_below = output_channels[-s]
        c_skip = output_channels[-(s + 1)]
        assert strides[-s] == 2, "only stride-2 transposed conv implemented"
        keys = jax.random.split(key, 8)
        key = keys[0]
        params.append(dict(
            tconv_w=0.1 * jax.random.normal(keys[1], (c_below, c_skip, 2, 2), jnp.float32),
            tconv_b=0.1 * jax.random.normal(keys[2], (c_skip,), jnp.float32),
            conv1_w=0.1 * jax.random.normal(keys[3], (c_skip, 2 * c_skip, 3, 3), jnp.float32),
            conv2_w=0.1 * jax.random.normal(keys[5], (c_skip, c_skip, 3, 3), jnp.float32),
            skip_w=0.1 * jax.random.normal(keys[7], (c_skip, 2 * c_skip), jnp.float32),
            in1_g=jnp.ones((c_skip,), jnp.float32), in1_b=jnp.zeros((c_skip,), jnp.float32),
            in2_g=jnp.ones((c_skip,), jnp.float32), in2_b=jnp.zeros((c_skip,), jnp.float32),
            in3_g=jnp.ones((c_skip,), jnp.float32), in3_b=jnp.zeros((c_skip,), jnp.float32),
        ))
    return params


def _to_fused(x_nchw):
    B, C, H, W = x_nchw.shape
    return jnp.transpose(x_nchw, (0, 2, 3, 1)).reshape(B, H, W * C).astype(jnp.float32)


def _from_fused(x_fused, C):
    B, H, L = x_fused.shape
    return jnp.transpose(x_fused.reshape(B, H, L // C, C), (0, 3, 1, 2))


def unet_res_decoder_forward(skips_nchw, stage_ops, deep_supervision=True):
    """skips_nchw: list of NCHW arrays, bottleneck last (PyTorch convention)."""
    lres = _to_fused(skips_nchw[-1])
    seg_outputs = []
    for s, ops in enumerate(stage_ops):
        skip_nchw = skips_nchw[-(s + 2)]
        c_skip = skip_nchw.shape[1]
        out = _run_stage(lres, _to_fused(skip_nchw), ops)   # fully fused stage
        seg_outputs.append((out, c_skip))
        lres = out                                          # fused layouts chain directly
    seg_outputs = seg_outputs[::-1]
    r = seg_outputs if deep_supervision else [seg_outputs[0]]
    return [_from_fused(o, c) for o, c in r]                # back to NCHW

# TODO(synk): seg head / logits upsampling is not part of this module's forward
# (it only returns the per-stage feature maps), so none is implemented.


# --------------------------------------------------------------------------
# Pure-JAX reference (NHWC) for correctness verification
# --------------------------------------------------------------------------

def _reference_forward(skips_nchw, params, deep_supervision=True):
    hi = jax.lax.Precision.HIGHEST

    def inorm(x, g, b):
        mean = jnp.mean(x, axis=(1, 2), keepdims=True)
        var = jnp.mean((x - mean) ** 2, axis=(1, 2), keepdims=True)
        return (x - mean) * jax.lax.rsqrt(var + EPS) * g + b

    def lrelu(x):
        return jnp.where(x >= 0, x, LRELU_SLOPE * x)

    def conv3x3(x, w):          # w: (Cout, Cin, 3, 3) PyTorch layout
        return jax.lax.conv_general_dilated(
            x, jnp.transpose(w, (2, 3, 1, 0)), (1, 1), ((1, 1), (1, 1)),
            dimension_numbers=('NHWC', 'HWIO', 'NHWC'), precision=hi)

    def conv1x1(x, w):          # w: (Cout, 2Cs)
        return jnp.einsum('bhwi,oi->bhwo', x, w, precision=hi)

    def tconv(x, w, b):         # w: (Cin, Cout, 2, 2)
        B, H, W, _ = x.shape
        Co = w.shape[1]
        y = jnp.einsum('bhwi,iojk->bhjwko', x, w, precision=hi)
        return y.reshape(B, 2 * H, 2 * W, Co) + b

    skips = [jnp.transpose(s, (0, 2, 3, 1)).astype(jnp.float32) for s in skips_nchw]
    lres = skips[-1]
    outs = []
    for s, p in enumerate(params):
        x = tconv(lres, p['tconv_w'], p['tconv_b'])
        xc = jnp.concatenate([x, skips[-(s + 2)]], axis=-1)
        h = lrelu(inorm(conv3x3(xc, p['conv1_w']), p['in1_g'], p['in1_b']))
        h = inorm(conv3x3(h, p['conv2_w']), p['in2_g'], p['in2_b'])
        sk = inorm(conv1x1(xc, p['skip_w']), p['in3_g'], p['in3_b'])
        out = lrelu(h + sk)
        outs.append(out)
        lres = out
    outs = outs[::-1]
    r = outs if deep_supervision else [outs[0]]
    return [jnp.transpose(o, (0, 3, 1, 2)) for o in r]


# --------------------------------------------------------------------------

if __name__ == "__main__":
    key = jax.random.PRNGKey(0)
    output_channels = [8, 16, 32]
    strides = [1, 2, 2]
    B = 2
    k1, k2, k3, kp = jax.random.split(key, 4)
    # skips in PyTorch NCHW, bottleneck last
    skips = [
        jax.random.normal(k1, (B, 8, 16, 16), jnp.float32),
        jax.random.normal(k2, (B, 16, 8, 8), jnp.float32),
        jax.random.normal(k3, (B, 32, 4, 4), jnp.float32),
    ]
    params = init_decoder_params(kp, output_channels, strides)
    stage_ops = prepare_decoder_operands(params, [s.shape for s in skips])

    outs = unet_res_decoder_forward(skips, stage_ops, deep_supervision=True)
    outs = jax.block_until_ready(outs)

    assert outs[0].shape == (B, 8, 16, 16), outs[0].shape   # highest-resolution stage
    assert outs[1].shape == (B, 16, 8, 8), outs[1].shape    # lower-resolution stage
    assert all(bool(jnp.all(jnp.isfinite(o))) for o in outs)

    # Verify against a pure-JAX NHWC reference of the same module.
    refs = _reference_forward(skips, params, deep_supervision=True)
    for o, r in zip(outs, refs):
        assert o.shape == r.shape, (o.shape, r.shape)
        err = float(jnp.max(jnp.abs(o - r)))
        assert err < 1e-1, f"max abs diff vs reference: {err}"

    print("KERNEL_OK")
</pallas_src>

<mosaic_0001>
module attributes {stable_mosaic.version = 11 : i64} {
  func.func @_stage_kernel(%arg0: i32, %arg1: memref<1x4x128xf32, #tpu.memory_space<vmem>>, %arg2: memref<1x8x128xf32, #tpu.memory_space<vmem>>, %arg3: memref<2x8x4xf32, #tpu.memory_space<vmem>>, %arg4: memref<2x128x128xf32, #tpu.memory_space<vmem>>, %arg5: memref<1x128xf32, #tpu.memory_space<vmem>>, %arg6: memref<3x128x128xf32, #tpu.memory_space<vmem>>, %arg7: memref<3x128x128xf32, #tpu.memory_space<vmem>>, %arg8: memref<3x128x128xf32, #tpu.memory_space<vmem>>, %arg9: memref<2x8x8xf32, #tpu.memory_space<vmem>>, %arg10: memref<2x128x128xf32, #tpu.memory_space<vmem>>, %arg11: memref<128x128xf32, #tpu.memory_space<vmem>>, %arg12: memref<6x128xf32, #tpu.memory_space<vmem>>, %arg13: memref<1x8x128xf32, #tpu.memory_space<vmem>>) attributes {dimension_semantics = [#tpu.dimension_semantics<parallel>], iteration_bounds = array<i64: 2>, scalar_prefetch = 0 : i64, scratch_operands = 0 : i64, tpu.core_type = #tpu.core_type<tc>, window_params = [{transform_indices = @transform_0, window_bounds = array<i64: 1, 4, 128>}, {transform_indices = @transform_1, window_bounds = array<i64: 1, 8, 128>}, {pipeline_mode = #tpu.pipeline_mode<synchronous>, transform_indices = @transform_2, window_bounds = array<i64: 2, 8, 4>}, {pipeline_mode = #tpu.pipeline_mode<synchronous>, transform_indices = @transform_3, window_bounds = array<i64: 2, 128, 128>}, {pipeline_mode = #tpu.pipeline_mode<synchronous>, transform_indices = @transform_4, window_bounds = array<i64: 1, 128>}, {pipeline_mode = #tpu.pipeline_mode<synchronous>, transform_indices = @transform_5, window_bounds = array<i64: 3, 128, 128>}, {pipeline_mode = #tpu.pipeline_mode<synchronous>, transform_indices = @transform_6, window_bounds = array<i64: 3, 128, 128>}, {pipeline_mode = #tpu.pipeline_mode<synchronous>, transform_indices = @transform_7, window_bounds = array<i64: 3, 128, 128>}, {pipeline_mode = #tpu.pipeline_mode<synchronous>, transform_indices = @transform_8, window_bounds = array<i64: 2, 8, 8>}, {pipeline_mode = #tpu.pipeline_mode<synchronous>, transform_indices = @transform_9, window_bounds = array<i64: 2, 128, 128>}, {pipeline_mode = #tpu.pipeline_mode<synchronous>, transform_indices = @transform_10, window_bounds = array<i64: 128, 128>}, {pipeline_mode = #tpu.pipeline_mode<synchronous>, transform_indices = @transform_11, window_bounds = array<i64: 6, 128>}, {transform_indices = @transform_12, window_bounds = array<i64: 1, 8, 128>}]} {
    %c0 = arith.constant 0 : index
    %c0_0 = arith.constant 0 : index
    %c0_1 = arith.constant 0 : index
    %0 = vector.load %arg1[%c0, %c0_0, %c0_1] : memref<1x4x128xf32, #tpu.memory_space<vmem>>, vector<1x4x128xf32>
    %1 = vector.shape_cast %0 : vector<1x4x128xf32> to vector<4x128xf32>
    %c0_2 = arith.constant 0 : index
    %c0_3 = arith.constant 0 : index
    %c0_4 = arith.constant 0 : index
    %2 = vector.load %arg2[%c0_2, %c0_3, %c0_4] : memref<1x8x128xf32, #tpu.memory_space<vmem>>, vector<1x8x128xf32>
    %3 = vector.shape_cast %2 : vector<1x8x128xf32> to vector<8x128xf32>
    %c0_5 = arith.constant 0 : index
    %c0_6 = arith.constant 0 : index
    %4 = vector.load %arg12[%c0_5, %c0_6] : memref<6x128xf32, #tpu.memory_space<vmem>>, vector<6x128xf32>
    %c0_7 = arith.constant 0 : index
    %c0_8 = arith.constant 0 : index
    %c0_9 = arith.constant 0 : index
    %5 = vector.load %arg4[%c0_7, %c0_8, %c0_9] : memref<2x128x128xf32, #tpu.memory_space<vmem>>, vector<1x128x128xf32>
    %6 = vector.shape_cast %5 : vector<1x128x128xf32> to vector<128x128xf32>
    %cst = arith.constant dense<0.000000e+00> : vector<4x128xf32>
    %7 = tpu.matmul %1, %6, %cst {dimension_numbers = #tpu.dot_dimension_numbers<[1], [0], [0], [1], [0, 0, 1, 1], [], []>} : vector<4x128xf32>, vector<128x128xf32>, vector<4x128xf32> -> vector<4x128xf32>
    %c1 = arith.constant 1 : index
    %c0_10 = arith.constant 0 : index
    %c0_11 = arith.constant 0 : index
    %8 = vector.load %arg4[%c1, %c0_10, %c0_11] : memref<2x128x128xf32, #tpu.memory_space<vmem>>, vector<1x128x128xf32>
    %9 = vector.shape_cast %8 : vector<1x128x128xf32> to vector<128x128xf32>
    %cst_12 = arith.constant dense<0.000000e+00> : vector<4x128xf32>
    %10 = tpu.matmul %1, %9, %cst_12 {dimension_numbers = #tpu.dot_dimension_numbers<[1], [0], [0], [1], [0, 0, 1, 1], [], []>} : vector<4x128xf32>, vector<128x128xf32>, vector<4x128xf32> -> vector<4x128xf32>
    %c0_13 = arith.constant 0 : index
    %c0_14 = arith.constant 0 : index
    %c0_15 = arith.constant 0 : index
    %11 = vector.load %arg3[%c0_13, %c0_14, %c0_15] : memref<2x8x4xf32, #tpu.memory_space<vmem>>, vector<1x8x4xf32>
    %12 = vector.shape_cast %11 : vector<1x8x4xf32> to vector<8x4xf32>
    %cst_16 = arith.constant dense<0.000000e+00> : vector<8x128xf32>
    %13 = tpu.matmul %12, %7, %cst_16 {dimension_numbers = #tpu.dot_dimension_numbers<[1], [0], [0], [1], [0, 0, 1, 1], [], []>} : vector<8x4xf32>, vector<4x128xf32>, vector<8x128xf32> -> vector<8x128xf32>
    %c1_17 = arith.constant 1 : index
    %c0_18 = arith.constant 0 : index
    %c0_19 = arith.constant 0 : index
    %14 = vector.load %arg3[%c1_17, %c0_18, %c0_19] : memref<2x8x4xf32, #tpu.memory_space<vmem>>, vector<1x8x4xf32>
    %15 = vector.shape_cast %14 : vector<1x8x4xf32> to vector<8x4xf32>
    %cst_20 = arith.constant dense<0.000000e+00> : vector<8x128xf32>
    %16 = tpu.matmul %15, %10, %cst_20 {dimension_numbers = #tpu.dot_dimension_numbers<[1], [0], [0], [1], [0, 0, 1, 1], [], []>} : vector<8x4xf32>, vector<4x128xf32>, vector<8x128xf32> -> vector<8x128xf32>
    %17 = arith.addf %13, %16 : vector<8x128xf32>
    %c0_21 = arith.constant 0 : index
    %c0_22 = arith.constant 0 : index
    %18 = vector.load %arg5[%c0_21, %c0_22] : memref<1x128xf32, #tpu.memory_space<vmem>>, vector<1x128xf32>
    %19 = vector.broadcast %18 : vector<1x128xf32> to vector<8x128xf32>
    %20 = arith.addf %17, %19 : vector<8x128xf32>
    %c0_23 = arith.constant 0 : index
    %c0_24 = arith.constant 0 : index
    %c0_25 = arith.constant 0 : index
    %21 = vector.load %arg6[%c0_23, %c0_24, %c0_25] : memref<3x128x128xf32, #tpu.memory_space<vmem>>, vector<1x128x128xf32>
    %22 = vector.shape_cast %21 : vector<1x128x128xf32> to vector<128x128xf32>
    %cst_26 = arith.constant dense<0.000000e+00> : vector<8x128xf32>
    %23 = tpu.matmul %20, %22, %cst_26 {dimension_numbers = #tpu.dot_dimension_numbers<[1], [0], [0], [1], [0, 0, 1, 1], [], []>} : vector<8x128xf32>, vector<128x128xf32>, vector<8x128xf32> -> vector<8x128xf32>
    %cst_27 = arith.constant 0.000000e+00 : f32
    %24 = vector.broadcast %cst_27 : f32 to vector<8x128xf32>
    %25 = arith.addf %24, %23 : vector<8x128xf32>
    %c0_28 = arith.constant 0 : index
    %c0_29 = arith.constant 0 : index
    %c0_30 = arith.constant 0 : index
    %26 = vector.load %arg7[%c0_28, %c0_29, %c0_30] : memref<3x128x128xf32, #tpu.memory_space<vmem>>, vector<1x128x128xf32>
    %27 = vector.shape_cast %26 : vector<1x128x128xf32> to vector<128x128xf32>
    %cst_31 = arith.constant dense<0.000000e+00> : vector<8x128xf32>
    %28 = tpu.matmul %3, %27, %cst_31 {dimension_numbers = #tpu.dot_dimension_numbers<[1], [0], [0], [1], [0, 0, 1, 1], [], []>} : vector<8x128xf32>, vector<128x128xf32>, vector<8x128xf32> -> vector<8x128xf32>
    %29 = arith.addf %25, %28 : vector<8x128xf32>
    %c1_32 = arith.constant 1 : index
    %c0_33 = arith.constant 0 : index
    %c0_34 = arith.constant 0 : index
    %30 = vector.load %arg6[%c1_32, %c0_33, %c0_34] : memref<3x128x128xf32, #tpu.memory_space<vmem>>, vector<1x128x128xf32>
    %31 = vector.shape_cast %30 : vector<1x128x128xf32> to vector<128x128xf32>
    %cst_35 = arith.constant dense<0.000000e+00> : vector<8x128xf32>
    %32 = tpu.matmul %20, %31, %cst_35 {dimension_numbers = #tpu.dot_dimension_numbers<[1], [0], [0], [1], [0, 0, 1, 1], [], []>} : vector<8x128xf32>, vector<128x128xf32>, vector<8x128xf32> -> vector<8x128xf32>
    %cst_36 = arith.constant 0.000000e+00 : f32
    %33 = vector.broadcast %cst_36 : f32 to vector<8x128xf32>
    %34 = arith.addf %33, %32 : vector<8x128xf32>
    %c1_37 = arith.constant 1 : index
    %c0_38 = arith.constant 0 : index
    %c0_39 = arith.constant 0 : index
    %35 = vector.load %arg7[%c1_37, %c0_38, %c0_39] : memref<3x128x128xf32, #tpu.memory_space<vmem>>, vector<1x128x128xf32>
    %36 = vector.shape_cast %35 : vector<1x128x128xf32> to vector<128x128xf32>
    %cst_40 = arith.constant dense<0.000000e+00> : vector<8x128xf32>
    %37 = tpu.matmul %3, %36, %cst_40 {dimension_numbers = #tpu.dot_dimension_numbers<[1], [0], [0], [1], [0, 0, 1, 1], [], []>} : vector<8x128xf32>, vector<128x128xf32>, vector<8x128xf32> -> vector<8x128xf32>
    %38 = arith.addf %34, %37 : vector<8x128xf32>
    %c2 = arith.constant 2 : index
    %c0_41 = arith.constant 0 : index
    %c0_42 = arith.constant 0 : index
    %39 = vector.load %arg6[%c2, %c0_41, %c0_42] : memref<3x128x128xf32, #tpu.memory_space<vmem>>, vector<1x128x128xf32>
    %40 = vector.shape_cast %39 : vector<1x128x128xf32> to vector<128x128xf32>
    %cst_43 = arith.constant dense<0.000000e+00> : vector<8x128xf32>
    %41 = tpu.matmul %20, %40, %cst_43 {dimension_numbers = #tpu.dot_dimension_numbers<[1], [0], [0], [1], [0, 0, 1, 1], [], []>} : vector<8x128xf32>, vector<128x128xf32>, vector<8x128xf32> -> vector<8x128xf32>
    %cst_44 = arith.constant 0.000000e+00 : f32
    %42 = vector.broadcast %cst_44 : f32 to vector<8x128xf32>
    %43 = arith.addf %42, %41 : vector<8x128xf32>
    %c2_45 = arith.constant 2 : index
    %c0_46 = arith.constant 0 : index
    %c0_47 = arith.constant 0 : index
    %44 = vector.load %arg7[%c2_45, %c0_46, %c0_47] : memref<3x128x128xf32, #tpu.memory_space<vmem>>, vector<1x128x128xf32>
    %45 = vector.shape_cast %44 : vector<1x128x128xf32> to vector<128x128xf32>
    %cst_48 = arith.constant dense<0.000000e+00> : vector<8x128xf32>
    %46 = tpu.matmul %3, %45, %cst_48 {dimension_numbers = #tpu.dot_dimension_numbers<[1], [0], [0], [1], [0, 0, 1, 1], [], []>} : vector<8x128xf32>, vector<128x128xf32>, vector<8x128xf32> -> vector<8x128xf32>
    %47 = arith.addf %43, %46 : vector<8x128xf32>
    %c0_49 = arith.constant 0 : index
    %c0_50 = arith.constant 0 : index
    %c0_51 = arith.constant 0 : index
    %48 = vector.load %arg9[%c0_49, %c0_50, %c0_51] : memref<2x8x8xf32, #tpu.memory_space<vmem>>, vector<1x8x8xf32>
    %49 = vector.shape_cast %48 : vector<1x8x8xf32> to vector<8x8xf32>
    %cst_52 = arith.constant dense<0.000000e+00> : vector<8x128xf32>
    %50 = tpu.matmul %49, %29, %cst_52 {dimension_numbers = #tpu.dot_dimension_numbers<[1], [0], [0], [1], [0, 0, 1, 1], [], []>} : vector<8x8xf32>, vector<8x128xf32>, vector<8x128xf32> -> vector<8x128xf32>
    %51 = arith.addf %38, %50 : vector<8x128xf32>
    %c1_53 = arith.constant 1 : index
    %c0_54 = arith.constant 0 : index
    %c0_55 = arith.constant 0 : index
    %52 = vector.load %arg9[%c1_53, %c0_54, %c0_55] : memref<2x8x8xf32, #tpu.memory_space<vmem>>, vector<1x8x8xf32>
    %53 = vector.shape_cast %52 : vector<1x8x8xf32> to vector<8x8xf32>
    %cst_56 = arith.constant dense<0.000000e+00> : vector<8x128xf32>
    %54 = tpu.matmul %53, %47, %cst_56 {dimension_numbers = #tpu.dot_dimension_numbers<[1], [0], [0], [1], [0, 0, 1, 1], [], []>} : vector<8x8xf32>, vector<8x128xf32>, vector<8x128xf32> -> vector<8x128xf32>
    %55 = arith.addf %51, %54 : vector<8x128xf32>
    %56 = vector.extract_strided_slice %4 {offsets = [0, 0], sizes = [1, 128], strides = [1, 1]} : vector<6x128xf32> to vector<1x128xf32>
    %57 = vector.extract_strided_slice %4 {offsets = [1, 0], sizes = [1, 128], strides = [1, 1]} : vector<6x128xf32> to vector<1x128xf32>
    %c0_57 = arith.constant 0 : index
    %c0_58 = arith.constant 0 : index
    %58 = vector.load %arg11[%c0_57, %c0_58] : memref<128x128xf32, #tpu.memory_space<vmem>>, vector<128x128xf32>
    %cst_59 = arith.constant dense<0.000000e+00> : vector<8x128xf32>
    %59 = tpu.matmul %55, %58, %cst_59 {dimension_numbers = #tpu.dot_dimension_numbers<[1], [0], [0], [1], [0, 0, 1, 1], [], []>} : vector<8x128xf32>, vector<128x128xf32>, vector<8x128xf32> -> vector<8x128xf32>
    %cst_60 = arith.constant dense<0.000000e+00> : vector<128xf32>
    %60 = vector.multi_reduction <add>, %59, %cst_60 [0] : vector<8x128xf32> to vector<128xf32>
    %61 = vector.shape_cast %60 : vector<128xf32> to vector<1x128xf32>
    %62 = arith.mulf %55, %55 : vector<8x128xf32>
    %c0_61 = arith.constant 0 : index
    %c0_62 = arith.constant 0 : index
    %63 = vector.load %arg11[%c0_61, %c0_62] : memref<128x128xf32, #tpu.memory_space<vmem>>, vector<128x128xf32>
    %cst_63 = arith.constant dense<0.000000e+00> : vector<8x128xf32>
    %64 = tpu.matmul %62, %63, %cst_63 {dimension_numbers = #tpu.dot_dimension_numbers<[1], [0], [0], [1], [0, 0, 1, 1], [], []>} : vector<8x128xf32>, vector<128x128xf32>, vector<8x128xf32> -> vector<8x128xf32>
    %cst_64 = arith.constant dense<0.000000e+00> : vector<128xf32>
    %65 = vector.multi_reduction <add>, %64, %cst_64 [0] : vector<8x128xf32> to vector<128xf32>
    %66 = vector.shape_cast %65 : vector<128xf32> to vector<1x128xf32>
    %67 = arith.mulf %61, %61 : vector<1x128xf32>
    %68 = arith.subf %66, %67 : vector<1x128xf32>
    %cst_65 = arith.constant 0.000000e+00 : f32
    %69 = vector.broadcast %cst_65 : f32 to vector<1x128xf32>
    %70 = arith.maximumf %68, %69 : vector<1x128xf32>
    %71 = vector.broadcast %61 : vector<1x128xf32> to vector<8x128xf32>
    %72 = arith.subf %55, %71 : vector<8x128xf32>
    %cst_66 = arith.constant 9.99999974E-6 : f32
    %73 = vector.broadcast %cst_66 : f32 to vector<1x128xf32>
    %74 = arith.addf %70, %73 : vector<1x128xf32>
    %75 = math.rsqrt %74 : vector<1x128xf32>
    %76 = arith.mulf %75, %56 : vector<1x128xf32>
    %77 = vector.broadcast %76 : vector<1x128xf32> to vector<8x128xf32>
    %78 = arith.mulf %72, %77 : vector<8x128xf32>
    %79 = vector.broadcast %57 : vector<1x128xf32> to vector<8x128xf32>
    %80 = arith.addf %78, %79 : vector<8x128xf32>
    %cst_67 = arith.constant 0.000000e+00 : f32
    %81 = vector.broadcast %cst_67 : f32 to vector<8x128xf32>
    %82 = arith.cmpf oge, %80, %81 : vector<8x128xf32>
    %cst_68 = arith.constant 0.00999999977 : f32
    %83 = vector.broadcast %cst_68 : f32 to vector<8x128xf32>
    %84 = arith.mulf %83, %80 : vector<8x128xf32>
    %85 = arith.select %82, %80, %84 : vector<8x128xi1>, vector<8x128xf32>
    %c0_69 = arith.constant 0 : index
    %c0_70 = arith.constant 0 : index
    %c0_71 = arith.constant 0 : index
    %86 = vector.load %arg8[%c0_69, %c0_70, %c0_71] : memref<3x128x128xf32, #tpu.memory_space<vmem>>, vector<1x128x128xf32>
    %87 = vector.shape_cast %86 : vector<1x128x128xf32> to vector<128x128xf32>
    %cst_72 = arith.constant dense<0.000000e+00> : vector<8x128xf32>
    %88 = tpu.matmul %85, %87, %cst_72 {dimension_numbers = #tpu.dot_dimension_numbers<[1], [0], [0], [1], [0, 0, 1, 1], [], []>} : vector<8x128xf32>, vector<128x128xf32>, vector<8x128xf32> -> vector<8x128xf32>
    %cst_73 = arith.constant 0.000000e+00 : f32
    %89 = vector.broadcast %cst_73 : f32 to vector<8x128xf32>
    %90 = arith.addf %89, %88 : vector<8x128xf32>
    %c1_74 = arith.constant 1 : index
    %c0_75 = arith.constant 0 : index
    %c0_76 = arith.constant 0 : index
    %91 = vector.load %arg8[%c1_74, %c0_75, %c0_76] : memref<3x128x128xf32, #tpu.memory_space<vmem>>, vector<1x128x128xf32>
    %92 = vector.shape_cast %91 : vector<1x128x128xf32> to vector<128x128xf32>
    %cst_77 = arith.constant dense<0.000000e+00> : vector<8x128xf32>
    %93 = tpu.matmul %85, %92, %cst_77 {dimension_numbers = #tpu.dot_dimension_numbers<[1], [0], [0], [1], [0, 0, 1, 1], [], []>} : vector<8x128xf32>, vector<128x128xf32>, vector<8x128xf32> -> vector<8x128xf32>
    %cst_78 = arith.constant 0.000000e+00 : f32
    %94 = vector.broadcast %cst_78 : f32 to vector<8x128xf32>
    %95 = arith.addf %94, %93 : vector<8x128xf32>
    %c2_79 = arith.constant 2 : index
    %c0_80 = arith.constant 0 : index
    %c0_81 = arith.constant 0 : index
    %96 = vector.load %arg8[%c2_79, %c0_80, %c0_81] : memref<3x128x128xf32, #tpu.memory_space<vmem>>, vector<1x128x128xf32>
    %97 = vector.shape_cast %96 : vector<1x128x128xf32> to vector<128x128xf32>
    %cst_82 = arith.constant dense<0.000000e+00> : vector<8x128xf32>
    %98 = tpu.matmul %85, %97, %cst_82 {dimension_numbers = #tpu.dot_dimension_numbers<[1], [0], [0], [1], [0, 0, 1, 1], [], []>} : vector<8x128xf32>, vector<128x128xf32>, vector<8x128xf32> -> vector<8x128xf32>
    %cst_83 = arith.constant 0.000000e+00 : f32
    %99 = vector.broadcast %cst_83 : f32 to vector<8x128xf32>
    %100 = arith.addf %99, %98 : vector<8x128xf32>
    %c0_84 = arith.constant 0 : index
    %c0_85 = arith.constant 0 : index
    %c0_86 = arith.constant 0 : index
    %101 = vector.load %arg9[%c0_84, %c0_85, %c0_86] : memref<2x8x8xf32, #tpu.memory_space<vmem>>, vector<1x8x8xf32>
    %102 = vector.shape_cast %101 : vector<1x8x8xf32> to vector<8x8xf32>
    %cst_87 = arith.constant dense<0.000000e+00> : vector<8x128xf32>
    %103 = tpu.matmul %102, %90, %cst_87 {dimension_numbers = #tpu.dot_dimension_numbers<[1], [0], [0], [1], [0, 0, 1, 1], [], []>} : vector<8x8xf32>, vector<8x128xf32>, vector<8x128xf32> -> vector<8x128xf32>
    %104 = arith.addf %95, %103 : vector<8x128xf32>
    %c1_88 = arith.constant 1 : index
    %c0_89 = arith.constant 0 : index
    %c0_90 = arith.constant 0 : index
    %105 = vector.load %arg9[%c1_88, %c0_89, %c0_90] : memref<2x8x8xf32, #tpu.memory_space<vmem>>, vector<1x8x8xf32>
    %106 = vector.shape_cast %105 : vector<1x8x8xf32> to vector<8x8xf32>
    %cst_91 = arith.constant dense<0.000000e+00> : vector<8x128xf32>
    %107 = tpu.matmul %106, %100, %cst_91 {dimension_numbers = #tpu.dot_dimension_numbers<[1], [0], [0], [1], [0, 0, 1, 1], [], []>} : vector<8x8xf32>, vector<8x128xf32>, vector<8x128xf32> -> vector<8x128xf32>
    %108 = arith.addf %104, %107 : vector<8x128xf32>
    %109 = vector.extract_strided_slice %4 {offsets = [2, 0], sizes = [1, 128], strides = [1, 1]} : vector<6x128xf32> to vector<1x128xf32>
    %110 = vector.extract_strided_slice %4 {offsets = [3, 0], sizes = [1, 128], strides = [1, 1]} : vector<6x128xf32> to vector<1x128xf32>
    %c0_92 = arith.constant 0 : index
    %c0_93 = arith.constant 0 : index
    %111 = vector.load %arg11[%c0_92, %c0_93] : memref<128x128xf32, #tpu.memory_space<vmem>>, vector<128x128xf32>
    %cst_94 = arith.constant dense<0.000000e+00> : vector<8x128xf32>
    %112 = tpu.matmul %108, %111, %cst_94 {dimension_numbers = #tpu.dot_dimension_numbers<[1], [0], [0], [1], [0, 0, 1, 1], [], []>} : vector<8x128xf32>, vector<128x128xf32>, vector<8x128xf32> -> vector<8x128xf32>
    %cst_95 = arith.constant dense<0.000000e+00> : vector<128xf32>
    %113 = vector.multi_reduction <add>, %112, %cst_95 [0] : vector<8x128xf32> to vector<128xf32>
    %114 = vector.shape_cast %113 : vector<128xf32> to vector<1x128xf32>
    %115 = arith.mulf %108, %108 : vector<8x128xf32>
    %c0_96 = arith.constant 0 : index
    %c0_97 = arith.constant 0 : index
    %116 = vector.load %arg11[%c0_96, %c0_97] : memref<128x128xf32, #tpu.memory_space<vmem>>, vector<128x128xf32>
    %cst_98 = arith.constant dense<0.000000e+00> : vector<8x128xf32>
    %117 = tpu.matmul %115, %116, %cst_98 {dimension_numbers = #tpu.dot_dimension_numbers<[1], [0], [0], [1], [0, 0, 1, 1], [], []>} : vector<8x128xf32>, vector<128x128xf32>, vector<8x128xf32> -> vector<8x128xf32>
    %cst_99 = arith.constant dense<0.000000e+00> : vector<128xf32>
    %118 = vector.multi_reduction <add>, %117, %cst_99 [0] : vector<8x128xf32> to vector<128xf32>
    %119 = vector.shape_cast %118 : vector<128xf32> to vector<1x128xf32>
    %120 = arith.mulf %114, %114 : vector<1x128xf32>
    %121 = arith.subf %119, %120 : vector<1x128xf32>
    %cst_100 = arith.constant 0.000000e+00 : f32
    %122 = vector.broadcast %cst_100 : f32 to vector<1x128xf32>
    %123 = arith.maximumf %121, %122 : vector<1x128xf32>
    %124 = vector.broadcast %114 : vector<1x128xf32> to vector<8x128xf32>
    %125 = arith.subf %108, %124 : vector<8x128xf32>
    %cst_101 = arith.constant 9.99999974E-6 : f32
    %126 = vector.broadcast %cst_101 : f32 to vector<1x128xf32>
    %127 = arith.addf %123, %126 : vector<1x128xf32>
    %128 = math.rsqrt %127 : vector<1x128xf32>
    %129 = arith.mulf %128, %109 : vector<1x128xf32>
    %130 = vector.broadcast %129 : vector<1x128xf32> to vector<8x128xf32>
    %131 = arith.mulf %125, %130 : vector<8x128xf32>
    %132 = vector.broadcast %110 : vector<1x128xf32> to vector<8x128xf32>
    %133 = arith.addf %131, %132 : vector<8x128xf32>
    %c0_102 = arith.constant 0 : index
    %c0_103 = arith.constant 0 : index
    %c0_104 = arith.constant 0 : index
    %134 = vector.load %arg10[%c0_102, %c0_103, %c0_104] : memref<2x128x128xf32, #tpu.memory_space<vmem>>, vector<1x128x128xf32>
    %135 = vector.shape_cast %134 : vector<1x128x128xf32> to vector<128x128xf32>
    %cst_105 = arith.constant dense<0.000000e+00> : vector<8x128xf32>
    %136 = tpu.matmul %20, %135, %cst_105 {dimension_numbers = #tpu.dot_dimension_numbers<[1], [0], [0], [1], [0, 0, 1, 1], [], []>} : vector<8x128xf32>, vector<128x128xf32>, vector<8x128xf32> -> vector<8x128xf32>
    %c1_106 = arith.constant 1 : index
    %c0_107 = arith.constant 0 : index
    %c0_108 = arith.constant 0 : index
    %137 = vector.load %arg10[%c1_106, %c0_107, %c0_108] : memref<2x128x128xf32, #tpu.memory_space<vmem>>, vector<1x128x128xf32>
    %138 = vector.shape_cast %137 : vector<1x128x128xf32> to vector<128x128xf32>
    %cst_109 = arith.constant dense<0.000000e+00> : vector<8x128xf32>
    %139 = tpu.matmul %3, %138, %cst_109 {dimension_numbers = #tpu.dot_dimension_numbers<[1], [0], [0], [1], [0, 0, 1, 1], [], []>} : vector<8x128xf32>, vector<128x128xf32>, vector<8x128xf32> -> vector<8x128xf32>
    %140 = arith.addf %136, %139 : vector<8x128xf32>
    %141 = vector.extract_strided_slice %4 {offsets = [4, 0], sizes = [1, 128], strides = [1, 1]} : vector<6x128xf32> to vector<1x128xf32>
    %142 = vector.extract_strided_slice %4 {offsets = [5, 0], sizes = [1, 128], strides = [1, 1]} : vector<6x128xf32> to vector<1x128xf32>
    %c0_110 = arith.constant 0 : index
    %c0_111 = arith.constant 0 : index
    %143 = vector.load %arg11[%c0_110, %c0_111] : memref<128x128xf32, #tpu.memory_space<vmem>>, vector<128x128xf32>
    %cst_112 = arith.constant dense<0.000000e+00> : vector<8x128xf32>
    %144 = tpu.matmul %140, %143, %cst_112 {dimension_numbers = #tpu.dot_dimension_numbers<[1], [0], [0], [1], [0, 0, 1, 1], [], []>} : vector<8x128xf32>, vector<128x128xf32>, vector<8x128xf32> -> vector<8x128xf32>
    %cst_113 = arith.constant dense<0.000000e+00> : vector<128xf32>
    %145 = vector.multi_reduction <add>, %144, %cst_113 [0] : vector<8x128xf32> to vector<128xf32>
    %146 = vector.shape_cast %145 : vector<128xf32> to vector<1x128xf32>
    %147 = arith.mulf %140, %140 : vector<8x128xf32>
    %c0_114 = arith.constant 0 : index
    %c0_115 = arith.constant 0 : index
    %148 = vector.load %arg11[%c0_114, %c0_115] : memref<128x128xf32, #tpu.memory_space<vmem>>, vector<128x128xf32>
    %cst_116 = arith.constant dense<0.000000e+00> : vector<8x128xf32>
    %149 = tpu.matmul %147, %148, %cst_116 {dimension_numbers = #tpu.dot_dimension_numbers<[1], [0], [0], [1], [0, 0, 1, 1], [], []>} : vector<8x128xf32>, vector<128x128xf32>, vector<8x128xf32> -> vector<8x128xf32>
    %cst_117 = arith.constant dense<0.000000e+00> : vector<128xf32>
    %150 = vector.multi_reduction <add>, %149, %cst_117 [0] : vector<8x128xf32> to vector<128xf32>
    %151 = vector.shape_cast %150 : vector<128xf32> to vector<1x128xf32>
    %152 = arith.mulf %146, %146 : vector<1x128xf32>
    %153 = arith.subf %151, %152 : vector<1x128xf32>
    %cst_118 = arith.constant 0.000000e+00 : f32
    %154 = vector.broadcast %cst_118 : f32 to vector<1x128xf32>
    %155 = arith.maximumf %153, %154 : vector<1x128xf32>
    %156 = vector.broadcast %146 : vector<1x128xf32> to vector<8x128xf32>
    %157 = arith.subf %140, %156 : vector<8x128xf32>
    %cst_119 = arith.constant 9.99999974E-6 : f32
    %158 = vector.broadcast %cst_119 : f32 to vector<1x128xf32>
    %159 = arith.addf %155, %158 : vector<1x128xf32>
    %160 = math.rsqrt %159 : vector<1x128xf32>
    %161 = arith.mulf %160, %141 : vector<1x128xf32>
    %162 = vector.broadcast %161 : vector<1x128xf32> to vector<8x128xf32>
    %163 = arith.mulf %157, %162 : vector<8x128xf32>
    %164 = vector.broadcast %142 : vector<1x128xf32> to vector<8x128xf32>
    %165 = arith.addf %163, %164 : vector<8x128xf32>
    %166 = arith.addf %133, %165 : vector<8x128xf32>
    %cst_120 = arith.constant 0.000000e+00 : f32
    %167 = vector.broadcast %cst_120 : f32 to vector<8x128xf32>
    %168 = arith.cmpf oge, %166, %167 : vector<8x128xf32>
    %cst_121 = arith.constant 0.00999999977 : f32
    %169 = vector.broadcast %cst_121 : f32 to vector<8x128xf32>
    %170 = arith.mulf %169, %166 : vector<8x128xf32>
    %171 = arith.select %168, %166, %170 : vector<8x128xi1>, vector<8x128xf32>
    %c0_122 = arith.constant 0 : index
    %c0_123 = arith.constant 0 : index
    %c0_124 = arith.constant 0 : index
    %172 = vector.load %arg13[%c0_122, %c0_123, %c0_124] : memref<1x8x128xf32, #tpu.memory_space<vmem>>, vector<1x8x128xf32>
    %173 = vector.shape_cast %172 : vector<1x8x128xf32> to vector<8x128xf32>
    %174 = vector.shape_cast %171 : vector<8x128xf32> to vector<1x8x128xf32>
    tpu.vector_store %arg13[%c0_122, %c0_123, %c0_124], %174 {strides = array<i32>} : memref<1x8x128xf32, #tpu.memory_space<vmem>>, vector<1x8x128xf32>,
    return
  }
  func.func @transform_0(%arg0: i32) -> (i32, i32, i32) {
    %c0_i32 = arith.constant 0 : i32
    %c0_i32_0 = arith.constant 0 : i32
    %c0_i32_1 = arith.constant 0 : i32
    return %arg0, %c0_i32, %c0_i32_0 : i32, i32, i32
  }
  func.func @transform_1(%arg0: i32) -> (i32, i32, i32) {
    %c0_i32 = arith.constant 0 : i32
    %c0_i32_0 = arith.constant 0 : i32
    %c0_i32_1 = arith.constant 0 : i32
    return %arg0, %c0_i32, %c0_i32_0 : i32, i32, i32
  }
  func.func @transform_2(%arg0: i32) -> (i32, i32, i32) {
    %c0_i32 = arith.constant 0 : i32
    %c0_i32_0 = arith.constant 0 : i32
    %c0_i32_1 = arith.constant 0 : i32
    %c0_i32_2 = arith.constant 0 : i32
    return %c0_i32, %c0_i32_0, %c0_i32_1 : i32, i32, i32
  }
  func.func @transform_3(%arg0: i32) -> (i32, i32, i32) {
    %c0_i32 = arith.constant 0 : i32
    %c0_i32_0 = arith.constant 0 : i32
    %c0_i32_1 = arith.constant 0 : i32
    %c0_i32_2 = arith.constant 0 : i32
    return %c0_i32, %c0_i32_0, %c0_i32_1 : i32, i32, i32
  }
  func.func @transform_4(%arg0: i32) -> (i32, i32) {
    %c0_i32 = arith.constant 0 : i32
    %c0_i32_0 = arith.constant 0 : i32
    %c0_i32_1 = arith.constant 0 : i32
    return %c0_i32, %c0_i32_0 : i32, i32
  }
  func.func @transform_5(%arg0: i32) -> (i32, i32, i32) {
    %c0_i32 = arith.constant 0 : i32
    %c0_i32_0 = arith.constant 0 : i32
    %c0_i32_1 = arith.constant 0 : i32
    %c0_i32_2 = arith.constant 0 : i32
    return %c0_i32, %c0_i32_0, %c0_i32_1 : i32, i32, i32
  }
  func.func @transform_6(%arg0: i32) -> (i32, i32, i32) {
    %c0_i32 = arith.constant 0 : i32
    %c0_i32_0 = arith.constant 0 : i32
    %c0_i32_1 = arith.constant 0 : i32
    %c0_i32_2 = arith.constant 0 : i32
    return %c0_i32, %c0_i32_0, %c0_i32_1 : i32, i32, i32
  }
  func.func @transform_7(%arg0: i32) -> (i32, i32, i32) {
    %c0_i32 = arith.constant 0 : i32
    %c0_i32_0 = arith.constant 0 : i32
    %c0_i32_1 = arith.constant 0 : i32
    %c0_i32_2 = arith.constant 0 : i32
    return %c0_i32, %c0_i32_0, %c0_i32_1 : i32, i32, i32
  }
  func.func @transform_8(%arg0: i32) -> (i32, i32, i32) {
    %c0_i32 = arith.constant 0 : i32
    %c0_i32_0 = arith.constant 0 : i32
    %c0_i32_1 = arith.constant 0 : i32
    %c0_i32_2 = arith.constant 0 : i32
    return %c0_i32, %c0_i32_0, %c0_i32_1 : i32, i32, i32
  }
  func.func @transform_9(%arg0: i32) -> (i32, i32, i32) {
    %c0_i32 = arith.constant 0 : i32
    %c0_i32_0 = arith.constant 0 : i32
    %c0_i32_1 = arith.constant 0 : i32
    %c0_i32_2 = arith.constant 0 : i32
    return %c0_i32, %c0_i32_0, %c0_i32_1 : i32, i32, i32
  }
  func.func @transform_10(%arg0: i32) -> (i32, i32) {
    %c0_i32 = arith.constant 0 : i32
    %c0_i32_0 = arith.constant 0 : i32
    %c0_i32_1 = arith.constant 0 : i32
    return %c0_i32, %c0_i32_0 : i32, i32
  }
  func.func @transform_11(%arg0: i32) -> (i32, i32) {
    %c0_i32 = arith.constant 0 : i32
    %c0_i32_0 = arith.constant 0 : i32
    %c0_i32_1 = arith.constant 0 : i32
    return %c0_i32, %c0_i32_0 : i32, i32
  }
  func.func @transform_12(%arg0: i32) -> (i32, i32, i32) {
    %c0_i32 = arith.constant 0 : i32
    %c0_i32_0 = arith.constant 0 : i32
    %c0_i32_1 = arith.constant 0 : i32
    return %arg0, %c0_i32, %c0_i32_0 : i32, i32, i32
  }
}

</mosaic_0001>

<bundles_post_ra>
// kernel: tpu_custom_call.1
= control target key start
LH: loop header
LB: loop body
LE: loop exit
PB: predicated region body
PF: predicated region fallthrough
CT: control target
= control target key end

     0   :  { %s2544_s0 = inlined_call_operand.vmem [shape: f32[2,4,128], index: 0, kind: input, shape index: {}]   ;;  %s2545_s1 = inlined_call_operand.vmem [shape: f32[2,8,128], index: 1, kind: input, shape index: {}]   ;;  %s2546_s2 = inlined_call_operand.vmem [shape: f32[2,8,4], index: 2, kind: input, shape index: {}]   ;;  %s2547_s3 = inlined_call_operand.hbm [shape: f32[2,128,128], index: 3, kind: input, shape index: {}]   ;;  %s2548_s4 = inlined_call_operand.hbm [shape: f32[1,128], index: 4, kind: input, shape index: {}]   ;;  %s2549_s5 = inlined_call_operand.hbm [shape: f32[3,128,128], index: 5, kind: input, shape index: {}]   ;;  %s2550_s6 = inlined_call_operand.hbm [shape: f32[3,128,128], index: 6, kind: input, shape index: {}]   ;;  %s2551_s7 = inlined_call_operand.hbm [shape: f32[3,128,128], index: 7, kind: input, shape index: {}]   ;;  %s2552_s8 = inlined_call_operand.hbm [shape: f32[2,8,8], index: 8, kind: input, shape index: {}]   ;;  %s2553_s9 = inlined_call_operand.hbm [shape: f32[2,128,128], index: 9, kind: input, shape index: {}]   ;;  %s2554_s10 = inlined_call_operand.hbm [shape: f32[128,128], index: 10, kind: input, shape index: {}]   ;;  %s2555_s11 = inlined_call_operand.vmem [shape: f32[6,128], index: 11, kind: input, shape index: {}]   ;;  %s2556_s12 = inlined_call_operand.hbm [shape: f32[2,8,128], index: 12, kind: output, shape index: {}]  }
   0x1   :  { %2561 = sst [smem:[#allocation27_spill]] %s2548_s4 }
   0x2   :  { %2562 = sst [smem:[#allocation28_spill]] %s2550_s6 }
   0x3   :  { %2563 = sst [smem:[#allocation29_spill]] %s2552_s8 }
   0x4   :  { %17 = vsyncpa [#allocation3], 0 }
   0x5   :  { %18 = vsyncpa [#allocation6], 0 }
   0x6   :  { %19 = vsyncpa [#allocation9], 0 }
   0x7   :  { %20 = vsyncpa [#allocation12], 0 }
   0x8   :  { %21 = vsyncpa [#allocation15], 0 }
   0x9   :  { %22 = vsyncpa [#allocation4], 0 }
   0xa   :  { %24 = vsyncpa [#allocation4 + $0x1], 0  ;;  %s2164_s21 = smov 0   ;;  %s2166_s22 = smov 0  }
   0xb   :  { %s2168_s23 = smov 0   ;;  %s2170_s24 = smov 0  }
   0xc LB: > { %2564 = sst [smem:[#allocation23_spill]] %s2083_s23  ;;  %s2185_s25 = sadd.s32 4294967295, %s2087_s24   ;;  %s2087_s24 = sphi %s2170_s24, %s2576_s24   ;;  %s2083_s23 = sphi %s2168_s23, %s2578_s23   ;;  %s2079_s22 = sphi %s2166_s22, %s2580_s22   ;;  %s2075_s21 = sphi %s2164_s21, %s2579_s21  }
   0xd   : > { %s1600_s26 = sadd.s32 4294967294, %s2087_s24   ;;  %s2189_s27 = sadd.s32 1, %s2087_s24  }
   0xe   : > { %2565 = sst [smem:[#allocation24_spill]] %s2189_s27  ;;  %s299_s28 = sadd.s32 1, %s2083_s23 }
   0xf   : > { %s296_s29 = ssub.s32 %s2087_s24, %s2189_s27  ;;  %p309_p0 = scmp.ne.s32.totalorder %s2083_s23, %s2079_s22 }
  0x10   : > { %p297_p1 = scmp.eq.s32.totalorder %s296_s29, 0  ;;  %p310_p2 = scmp.eq.s32.totalorder %s2185_s25, 1 }
  0x11   : > { %p315_p3 = scmp.ne.s32.totalorder %s2079_s22, %s2075_s21  ;;  %p316_p4 = scmp.eq.s32.totalorder %s1600_s26, 1 }
  0x12   : > { %s2200_s30 = scalar_select %p297_p1, %s2083_s23, %s299_s28  }
  0x13   : > { %p2202_p5 = por %p310_p2, %p309_p0  ;;  %p2206_p6 = por %p316_p4, %p315_p3 }
  0x14   : > { %2566 = sst [smem:[#allocation25_spill]] %s2200_s30  ;;  %p1601_p7 = scmp.ge.s32.totalorder %s2087_s24, 1 }
  0x15   : > { %s2568_s14 = scalar_select %p2206_p6, 1, 0 }
  0x16   : > { %p323_p8 = scmp.lt.s32.totalorder %s2087_s24, 3  ;;  %p1699_p9 = scmp.eq.s32.totalorder %s2185_s25, 0 }
  0x17   : > { %2569 = sst [smem:[#allocation26_spill]] %s2568_s14  ;;  %s2089_s19 = smov [#allocation5]  }
  0x18   : > { %p2213_p10 = pnand %p1601_p7, %p323_p8  ;;  %s2571_s4 = sld [smem:[#allocation27_spill]] }
  0x19   : > { %s354_s20 = sshll.u32 %s2089_s19, 4  ;;  %s2573_s6 = sld [smem:[#allocation28_spill]]  ;;  %s355_s20 = int_to_ptr.vmem [resolvable:$true] %s354_s20 }
  0x1a   : > { %p1670_p11 = pneg %p2213_p10  ;;  %s2090_s16 = smov [#allocation8]  }
  0x1b   : > { %s379_s17 = sshll.u32 %s2090_s16, 4  ;;  %s2574_s8 = sld [smem:[#allocation29_spill]]  ;;  %s380_s17 = int_to_ptr.vmem [resolvable:$true] %s379_s17 }
  0x1c   : > { %p2224_p12 = pnand %p1699_p9, %p1670_p11  ;;  %s2091_s27 = smov 128  }
  0x1d   : > { %s2092_s14 = smov 8   ;;  %s391_s29 = sshll.u32 %s2551_s7, 4  ;;  %s392_s29 = int_to_ptr.hbm [resolvable:$true] %s391_s29 }
  0x1e   : > { %s352_s18 = sshll.u32 %s2571_s4, 4  ;;  %s2094_s4 = smov [#allocation2]   ;;  %s353_s18 = int_to_ptr.hbm [resolvable:$true] %s352_s18 }
  0x1f   : > { %s377_s30 = sshll.u32 %s2573_s6, 4  ;;  %s339_s19 = sshll.u32 %s2094_s4, 4  ;;  %s378_s30 = int_to_ptr.hbm [resolvable:$true] %s377_s30  ;;  %s340_s19 = int_to_ptr.vmem [resolvable:$true] %s339_s19 }
  0x20   : > { %1676 = dma.hbm_to_vmem [thread:$0]  (!%p2224_p12), %s353_s18, 16, %s355_s20, [#allocation6]  }
  0x21   : > { %s405_s23 = sshll.u32 %s2574_s8, 4  ;;  %s337_s18 = sshll.u32 %s2547_s3, 4  ;;  %s406_s23 = int_to_ptr.hbm [resolvable:$true] %s405_s23  ;;  %s338_s18 = int_to_ptr.hbm [resolvable:$true] %s337_s18 }
  0x22   : > { %1682 = dma.hbm_to_vmem [thread:$0]  (!%p2224_p12), %s378_s30, 6144, %s380_s17, [#allocation9], %s2091_s27, %s2091_s27, %s2092_s14  }
  0x23   : > { %s2093_s20 = smov [#allocation11]   ;;  %s363_s30 = sshll.u32 %s2549_s5, 4  ;;  %s364_s30 = int_to_ptr.hbm [resolvable:$true] %s363_s30 }
  0x24   : > { %s407_s16 = sshll.u32 %s2093_s20, 4  ;;  %s2095_s20 = smov [#allocation7]   ;;  %s408_s16 = int_to_ptr.vmem [resolvable:$true] %s407_s16 }
  0x25   : > { %1688 = dma.hbm_to_vmem [thread:$0]  (!%p2224_p12), %s406_s23, 256, %s408_s16, [#allocation12], %s2091_s27, %s2091_s27, %s2092_s14  }
  0x26   : > { %1673 = dma.hbm_to_vmem [thread:$0]  (!%p2224_p12), %s338_s18, 4096, %s340_s19, [#allocation3], %s2091_s27, %s2091_s27, %s2092_s14  }
  0x27   : > { %s365_s23 = sshll.u32 %s2095_s20, 4  ;;  %s2096_s6 = smov [#allocation10]   ;;  %s366_s23 = int_to_ptr.vmem [resolvable:$true] %s365_s23 }
  0x28   : > { %1679 = dma.hbm_to_vmem [thread:$0]  (!%p2224_p12), %s364_s30, 6144, %s366_s23, [#allocation6], %s2091_s27, %s2091_s27, %s2092_s14  }
  0x29   : > { %s393_s8 = sshll.u32 %s2096_s6, 4  ;;  %s419_s18 = sshll.u32 %s2553_s9, 4  ;;  %s394_s8 = int_to_ptr.vmem [resolvable:$true] %s393_s8  ;;  %s420_s18 = int_to_ptr.hbm [resolvable:$true] %s419_s18 }
  0x2a   : > { %1685 = dma.hbm_to_vmem [thread:$0]  (!%p2224_p12), %s392_s29, 6144, %s394_s8, [#allocation9], %s2091_s27, %s2091_s27, %s2092_s14  }
  0x2b   : > { %s433_s28 = sshll.u32 %s2554_s10, 4  ;;  %s2097_s20 = smov [#allocation13]   ;;  %s434_s28 = int_to_ptr.hbm [resolvable:$true] %s433_s28 }
  0x2c   : > { %s421_s30 = sshll.u32 %s2097_s20, 4  ;;  %s2098_s23 = smov [#allocation14]   ;;  %s422_s30 = int_to_ptr.vmem [resolvable:$true] %s421_s30 }
  0x2d   : > { %1691 = dma.hbm_to_vmem [thread:$0]  (!%p2224_p12), %s420_s18, 4096, %s422_s30, [#allocation12], %s2091_s27, %s2091_s27, %s2092_s14  }
  0x2e   : > { %s435_s6 = sshll.u32 %s2098_s23, 4  ;;  %468 = sbr.rel (%p2213_p10) target bundleno = 1283 (0x503), region = 68  ;;  %s436_s6 = int_to_ptr.vmem [resolvable:$true] %s435_s6 }
  0x2f   : > { %1694 = dma.hbm_to_vmem [thread:$0]  (!%p2224_p12), %s434_s28, 2048, %s436_s6, [#allocation15], %s2091_s27, %s2091_s27, %s2092_s14  }
  0x33   : > { %2050 = dma.done.wait (%p1699_p9), [#allocation3], 4096  }
  0x34   : > { %2052 = vsyncadd (%p1699_p9), [#allocation3], 4294963200 }
  0x35   : > { %2054 = dma.done.wait (%p1699_p9), [#allocation6], 6160  }
  0x36   : > { %2056 = vsyncadd (%p1699_p9), [#allocation6], 4294961136 }
  0x37   : > { %2058 = dma.done.wait (%p1699_p9), [#allocation9], 12288  }
  0x38   : > { %2060 = vsyncadd (%p1699_p9), [#allocation9], 4294955008 }
  0x39   : > { %2062 = dma.done.wait (%p1699_p9), [#allocation12], 4352  }
  0x3a   : > { %2064 = vsyncadd (%p1699_p9), [#allocation12], 4294962944 }
  0x3b   : > { %2066 = dma.done.wait (%p1699_p9), [#allocation15], 2048  }
  0x3c   : > { %2068 = vsyncadd (%p1699_p9), [#allocation15], 4294965248  ;;  %v575_v0 = vld [vmem:[#allocation2 + $0x78] sm:$0xff]  ;;  %v574_v2 = vld [vmem:[#allocation2 + $0x70] sm:$0xff]  ;;  %p549_p13 = scmp.lt.s32.totalorder %s2185_s25, 1  ;;  %vm640_vm0 = vcmask 1043456  }
  0x3d   : > { %v612_v1 = vld [vmem:[#allocation2 + $0xf8] sm:$0xff]  ;;  %576 = vmatpush.msra.mxu0 %v575_v0  ;;  %v611_v3 = vld [vmem:[#allocation2 + $0xf0] sm:$0xff]  ;;  %v573_v4 = vld [vmem:[#allocation2 + $0x68] sm:$0xff]  ;;  %vm636_vm1 = vcmask 31744   ;;  %vm916_vm2 = vcmask 64512   ;;  %s546_s6 = sand.u32 1, %s2079_s22  }
  0x3e   : > { %613 = vmatpush.msra.mxu1 %v612_v1  ;;  %v610_v5 = vld [vmem:[#allocation2 + $0xe8] sm:$0xff]  ;;  %v572_v6 = vld [vmem:[#allocation2 + $0x60] sm:$0xff]  ;;  %v571_v8 = vld [vmem:[#allocation2 + $0x58] sm:$0xff]  ;;  %s2310_s27 = scalar_select %p549_p13, %s2185_s25, 1 }
  0x3f   : > { %577 = vmatpush.msra.mxu0 %v574_v2  ;;  %v609_v7 = vld [vmem:[#allocation2 + $0xe0] sm:$0xff]  ;;  %v608_v9 = vld [vmem:[#allocation2 + $0xd8] sm:$0xff]  ;;  %v570_v10 = vld [vmem:[#allocation2 + $0x50] sm:$0xff]  ;;  %s1435_s18 = scalar_lea.sflag [#allocation4], %s546_s6 }
  0x40   : > { %614 = vmatpush.msra.mxu1 %v611_v3  ;;  %v607_v11 = vld [vmem:[#allocation2 + $0xd0] sm:$0xff]  ;;  %v569_v12 = vld [vmem:[#allocation2 + $0x48] sm:$0xff]  ;;  %v568_v14 = vld [vmem:[#allocation2 + $0x40] sm:$0xff]  ;;  %s1621_s14 = sshll.u32 %s2310_s27, 2  ;;  %s1622_s19 = sshll.u32 %s2310_s27, 3 }
  0x41   : > { %578 = vmatpush.msra.mxu0 %v573_v4  ;;  %v606_v13 = vld [vmem:[#allocation2 + $0xc8] sm:$0xff]  ;;  %v605_v15 = vld [vmem:[#allocation2 + $0xc0] sm:$0xff]  ;;  %v567_v16 = vld [vmem:[#allocation2 + $0x38] sm:$0xff]  ;;  %s552_s29 = scalar_lea.vmem %s2544_s0, %s1621_s14  ;;  %s556_s20 = scalar_lea.vmem %s2545_s1, %s1622_s19 }
  0x42   : > { %615 = vmatpush.msra.mxu1 %v610_v5  ;;  %v604_v17 = vld [vmem:[#allocation2 + $0xb8] sm:$0xff]  ;;  %v566_v18 = vld [vmem:[#allocation2 + $0x30] sm:$0xff]  ;;  %v565_v20 = vld [vmem:[#allocation2 + $0x28] sm:$0xff]  ;;  %s1620_s27 = sshll.u32 %s546_s6, 3  ;;  %s1633_s14 = sshll.u32 %s2185_s25, 3 }
  0x43   : > { %579 = vmatpush.msra.mxu0 %v572_v6  ;;  %v603_v19 = vld [vmem:[#allocation2 + $0xb0] sm:$0xff]  ;;  %v602_v21 = vld [vmem:[#allocation2 + $0xa8] sm:$0xff]  ;;  %v564_v22 = vld [vmem:[#allocation2 + $0x20] sm:$0xff]  ;;  %s548_s8 = scalar_lea.vmem [#allocation16], %s1620_s27 }
  0x44   : > { %616 = vmatpush.msra.mxu1 %v609_v7  ;;  %v601_v23 = vld [vmem:[#allocation2 + $0xa0] sm:$0xff]  ;;  %v563_v24 = vld [vmem:[#allocation2 + $0x18] sm:$0xff]  ;;  %v562_v26 = vld [vmem:[#allocation2 + $0x10] sm:$0xff]  ;;  %s1447_s16 = sshll.u32 %s548_s8, 4  ;;  %s1448_s16 = int_to_ptr.vmem [resolvable:$true] %s1447_s16 }
  0x45   : > { %580 = vmatpush.msra.mxu0 %v571_v8  ;;  %v600_v25 = vld [vmem:[#allocation2 + $0x98] sm:$0xff]  ;;  %v599_v27 = vld [vmem:[#allocation2 + $0x90] sm:$0xff]  ;;  %v561_v28 = vld [vmem:[#allocation2 + $0x8] sm:$0xff] }
  0x46   : > { %617 = vmatpush.msra.mxu1 %v608_v9  ;;  %v598_v29 = vld [vmem:[#allocation2 + $0x88] sm:$0xff]  ;;  %v560_v30 = vld [vmem:[#allocation2] sm:$0xff]  ;;  %v799_v35 = vld [vmem:[#allocation8 + $0xf0] sm:$0xff] }
  0x47   : > { %581 = vmatpush.msra.mxu0 %v570_v10  ;;  %v597_v31 = vld [vmem:[#allocation2 + $0x80] sm:$0xff]  ;;  %v782_v36 = vld [vmem:[#allocation7 + $0xf0] sm:$0xff]  ;;  %v798_v37 = vld [vmem:[#allocation8 + $0xe8] sm:$0xff] }
  0x48   : > { %618 = vmatpush.msra.mxu1 %v607_v11  ;;  %v557_v32 = vld [vmem:[%s552_s29] sm:$0xf]  ;;  %v781_v38 = vld [vmem:[#allocation7 + $0xe8] sm:$0xff]  ;;  %v725_v49 = vld [vmem:[#allocation8 + $0x70] sm:$0xff]  ;;  %s1445_s29 = scalar_lea.hbm %s2556_s12, %s1633_s14 }
  0x49   : > { %582 = vmatpush.msra.mxu0 %v569_v12  ;;  %v800_v33 = vld [vmem:[#allocation8 + $0xf8] sm:$0xff]  ;;  %v1623_v39 = vld [vmem:[%s2546_s2 + $0x8] sm:$0xff]  ;;  %v709_v50 = vld [vmem:[#allocation7 + $0x70] sm:$0xff]  ;;  %s1449_s4 = sshll.u32 %s1445_s29, 4  ;;  %s1450_s4 = int_to_ptr.hbm [resolvable:$true] %s1449_s4 }
  0x4a   : > { %619 = vmatpush.msra.mxu1 %v606_v13  ;;  %v783_v34 = vld [vmem:[#allocation7 + $0xf8] sm:$0xff]  ;;  %v797_v41 = vld [vmem:[#allocation8 + $0xe0] sm:$0xff]  ;;  %v795_v51 = vld [vmem:[#allocation8 + $0xd0] sm:$0xff]  ;;  %s2019_s25 = sshra.s32 %s1450_s4, 4  ;;  %s2020_s25 = int_to_ptr.hbm [resolvable:$true] %s2019_s25 }
  0x4b   : > { %583 = vmatpush.msra.mxu0 %v568_v14  ;;  %v633_v40 = vld [vmem:[%s2546_s2] sm:$0xff]  ;;  %v778_v52 = vld [vmem:[#allocation7 + $0xd0] sm:$0xff]  ;;  %v724_v53 = vld [vmem:[#allocation8 + $0x68] sm:$0xff]  ;;  %s2021_s19 = scalar_lea.hbm %s2020_s25, 8  ;;  %p2026_p3 = scmp.lt.s32.totalorder %s2020_s25, %s2556_s12 }
  0x4c   : > { %620 = vmatpush.msra.mxu1 %v605_v15  ;;  %v780_v42 = vld [vmem:[#allocation7 + $0xe0] sm:$0xff]  ;;  %v726_v45 = vld [vmem:[#allocation8 + $0x78] sm:$0xff]  ;;  %v708_v54 = vld [vmem:[#allocation7 + $0x68] sm:$0xff]  ;;  %p2022_p0 = scmp.ne.s32.totalorder %s2020_s25, %s2021_s19 }
  0x4d   : > { %584 = vmatpush.msra.mxu0 %v567_v16  ;;  %v710_v46 = vld [vmem:[#allocation7 + $0x78] sm:$0xff]  ;;  %v794_v55 = vld [vmem:[#allocation8 + $0xc8] sm:$0xff]  ;;  %v723_v57 = vld [vmem:[#allocation8 + $0x60] sm:$0xff] }
  0x4e   : > { %621 = vmatpush.msra.mxu1 %v604_v17  ;;  %v796_v47 = vld [vmem:[#allocation8 + $0xd8] sm:$0xff]  ;;  %v777_v56 = vld [vmem:[#allocation7 + $0xc8] sm:$0xff]  ;;  %v707_v58 = vld [vmem:[#allocation7 + $0x60] sm:$0xff]  ;;  %p2023_p1 = pnand %p2022_p0, %p2202_p5 }
  0x4f   : > { %585 = vmatpush.msra.mxu0 %v566_v18  ;;  %v779_v48 = vld [vmem:[#allocation7 + $0xd8] sm:$0xff]  ;;  %v793_v59 = vld [vmem:[#allocation8 + $0xc0] sm:$0xff]  ;;  %v721_v1 = vld [vmem:[#allocation8 + $0x50] sm:$0xff] }
  0x50   : > { %622 = vmatpush.msra.mxu1 %v603_v19  ;;  %v776_v60 = vld [vmem:[#allocation7 + $0xc0] sm:$0xff]  ;;  %v722_v61 = vld [vmem:[#allocation8 + $0x58] sm:$0xff]  ;;  %v705_v2 = vld [vmem:[#allocation7 + $0x50] sm:$0xff]  ;;  %p2024_p2 = pneg %p2023_p1 }
  0x51   : > { %586 = vmatpush.msra.mxu0 %v565_v20  ;;  %v706_v62 = vld [vmem:[#allocation7 + $0x58] sm:$0xff]  ;;  %v791_v3 = vld [vmem:[#allocation8 + $0xb0] sm:$0xff]  ;;  %v720_v5 = vld [vmem:[#allocation8 + $0x48] sm:$0xff] }
  0x52   : > { %623 = vmatpush.msra.mxu1 %v602_v21  ;;  %v792_v63 = vld [vmem:[#allocation8 + $0xb8] sm:$0xff]  ;;  %v774_v4 = vld [vmem:[#allocation7 + $0xb0] sm:$0xff]  ;;  %v704_v6 = vld [vmem:[#allocation7 + $0x48] sm:$0xff] }
  0x53   : > { %587 = vmatpush.msra.mxu0 %v564_v22  ;;  %v775_v0 = vld [vmem:[#allocation7 + $0xb8] sm:$0xff]  ;;  %v790_v7 = vld [vmem:[#allocation8 + $0xa8] sm:$0xff]  ;;  %v719_v9 = vld [vmem:[#allocation8 + $0x40] sm:$0xff] }
  0x54   : > { %624 = vmatpush.msra.mxu1 %v601_v23  ;;  %v773_v8 = vld [vmem:[#allocation7 + $0xa8] sm:$0xff]  ;;  %v703_v10 = vld [vmem:[#allocation7 + $0x40] sm:$0xff]  ;;  %v718_v13 = vld [vmem:[#allocation8 + $0x38] sm:$0xff] }
  0x55   : > { %588 = vmatpush.msra.mxu0 %v563_v24  ;;  %v789_v11 = vld [vmem:[#allocation8 + $0xa0] sm:$0xff]  ;;  %v702_v14 = vld [vmem:[#allocation7 + $0x38] sm:$0xff]  ;;  %v717_v17 = vld [vmem:[#allocation8 + $0x30] sm:$0xff] }
  0x56   : > { %625 = vmatpush.msra.mxu1 %v600_v25  ;;  %v772_v12 = vld [vmem:[#allocation7 + $0xa0] sm:$0xff]  ;;  %v788_v15 = vld [vmem:[#allocation8 + $0x98] sm:$0xff]  ;;  %v701_v18 = vld [vmem:[#allocation7 + $0x30] sm:$0xff] }
  0x57   : > { %589 = vmatpush.msra.mxu0 %v562_v26  ;;  %v771_v16 = vld [vmem:[#allocation7 + $0x98] sm:$0xff]  ;;  %v716_v19 = vld [vmem:[#allocation8 + $0x28] sm:$0xff]  ;;  %v715_v21 = vld [vmem:[#allocation8 + $0x20] sm:$0xff] }
  0x58   : > { %626 = vmatpush.msra.mxu1 %v599_v27  ;;  %v700_v20 = vld [vmem:[#allocation7 + $0x28] sm:$0xff]  ;;  %v699_v22 = vld [vmem:[#allocation7 + $0x20] sm:$0xff]  ;;  %v714_v23 = vld [vmem:[#allocation8 + $0x18] sm:$0xff] }
  0x59   : > { %590 = vmatpush.msra.mxu0 %v561_v28  ;;  %v698_v24 = vld [vmem:[#allocation7 + $0x18] sm:$0xff]  ;;  %v713_v25 = vld [vmem:[#allocation8 + $0x10] sm:$0xff]  ;;  %v712_v27 = vld [vmem:[#allocation8 + $0x8] sm:$0xff] }
  0x5a   : > { %627 = vmatpush.msra.mxu1 %v598_v29  ;;  %v697_v26 = vld [vmem:[#allocation7 + $0x10] sm:$0xff]  ;;  %v696_v28 = vld [vmem:[#allocation7 + $0x8] sm:$0xff]  ;;  %v711_v29 = vld [vmem:[#allocation8] sm:$0xff] }
  0x5b   : > { %591 = vmatpush.msra.mxu0 %v560_v30  ;;  %v695_v30 = vld [vmem:[#allocation7] sm:$0xff] }
  0x5c   : > { %628 = vmatpush.msra.mxu1 %v597_v31  ;;  %592 = vmatmul.f32.vlgmr.msra.gmra.mxu0 %v557_v32  ;;  %v874_v31 = vld [vmem:[#allocation8 + $0x178] sm:$0xff] }
  0x5d   : > { %629 = vmatmul.f32.vlgmr.msra.gmra.mxu1 %v557_v32  ;;  %801 = vmatpush.msrb.mxu0 %v800_v33  ;;  %v857_v32 = vld [vmem:[#allocation7 + $0x178] sm:$0xff]  ;;  %v873_v33 = vld [vmem:[#allocation8 + $0x170] sm:$0xff] }
  0x5e   : > { %821 = vmatpush.msrb.mxu1 %v783_v34  ;;  %v856_v34 = vld [vmem:[#allocation7 + $0x170] sm:$0xff] }
  0x5f   : > { %802 = vmatpush.msrb.mxu0 %v799_v35  ;;  %v872_v35 = vld [vmem:[#allocation8 + $0x168] sm:$0xff] }
  0x60   : > { %822 = vmatpush.msrb.mxu1 %v782_v36  ;;  %v855_v36 = vld [vmem:[#allocation7 + $0x168] sm:$0xff] }
  0x61   : > { %803 = vmatpush.msrb.mxu0 %v798_v37  ;;  %v871_v37 = vld [vmem:[#allocation8 + $0x160] sm:$0xff] }
  0x62   : > { %823 = vmatpush.msrb.mxu1 %v781_v38  ;;  %v854_v38 = vld [vmem:[#allocation7 + $0x160] sm:$0xff] }
  0x63   : > { %804 = vmatpush.msrb.mxu0 %v797_v41  ;;  %v869_v41 = vld [vmem:[#allocation8 + $0x150] sm:$0xff] }
  0x64   : > { %824 = vmatpush.msrb.mxu1 %v780_v42  ;;  %v852_v42 = vld [vmem:[#allocation7 + $0x150] sm:$0xff] }
  0x65   : > { %805 = vmatpush.msrb.mxu0 %v796_v47  ;;  %v866_v47 = vld [vmem:[#allocation8 + $0x138] sm:$0xff] }
  0x66   : > { %825 = vmatpush.msrb.mxu1 %v779_v48  ;;  %v849_v48 = vld [vmem:[#allocation7 + $0x138] sm:$0xff] }
  0x67   : > { %806 = vmatpush.msrb.mxu0 %v795_v51  ;;  %v865_v51 = vld [vmem:[#allocation8 + $0x130] sm:$0xff] }
  0x68   : > { %826 = vmatpush.msrb.mxu1 %v778_v52  ;;  %v848_v52 = vld [vmem:[#allocation7 + $0x130] sm:$0xff] }
  0x69   : > { %807 = vmatpush.msrb.mxu0 %v794_v55  ;;  %v864_v55 = vld [vmem:[#allocation8 + $0x128] sm:$0xff] }
  0x6a   : > { %827 = vmatpush.msrb.mxu1 %v777_v56  ;;  %v847_v56 = vld [vmem:[#allocation7 + $0x128] sm:$0xff] }
  0x6b   : > { %808 = vmatpush.msrb.mxu0 %v793_v59  ;;  %v863_v59 = vld [vmem:[#allocation8 + $0x120] sm:$0xff] }
  0x6c   : > { %828 = vmatpush.msrb.mxu1 %v776_v60  ;;  %v846_v60 = vld [vmem:[#allocation7 + $0x120] sm:$0xff] }
  0x6d   : > { %809 = vmatpush.msrb.mxu0 %v792_v63  ;;  %v845_v63 = vld [vmem:[#allocation7 + $0x118] sm:$0xff] }
  0x6e   : > { %829 = vmatpush.msrb.mxu1 %v775_v0  ;;  %v861_v0 = vld [vmem:[#allocation8 + $0x110] sm:$0xff] }
  0x6f   : > { %810 = vmatpush.msrb.mxu0 %v791_v3  ;;  %v843_v3 = vld [vmem:[#allocation7 + $0x108] sm:$0xff] }
  0x70   : > { %830 = vmatpush.msrb.mxu1 %v774_v4  ;;  %v859_v4 = vld [vmem:[#allocation8 + $0x100] sm:$0xff] }
  0x71   : > { %811 = vmatpush.msrb.mxu0 %v790_v7 }
  0x72   : > { %831 = vmatpush.msrb.mxu1 %v773_v8 }
  0x73   : > { %812 = vmatpush.msrb.mxu0 %v789_v11  ;;  %v2336_v11 = vld [vmem:[#allocation14 + $0x78] sm:$0xff] }
  0x74   : > { %832 = vmatpush.msrb.mxu1 %v772_v12  ;;  %v2338_v12 = vld [vmem:[#allocation14 + $0x70] sm:$0xff] }
  0x75   : > { %813 = vmatpush.msrb.mxu0 %v788_v15  ;;  %v2350_v15 = vld [vmem:[#allocation14 + $0x58] sm:$0xff] }
  0x76   : > { %833 = vmatpush.msrb.mxu1 %v771_v16  ;;  %v2354_v16 = vld [vmem:[#allocation14 + $0x50] sm:$0xff] }
  0xd9   : > { %v593_v43 = vpop.f32.mrf.mxu0 }
  0xda   : > { %v630_v44 = vpop.f32.mrf.mxu1  ;;  %1626 = vmatpush.msk.msra.mxu3 %vm640_vm0, %v593_v43  ;;  %v868_v43 = vld [vmem:[#allocation8 + $0x148] sm:$0xff] }
  0xdb   : > { %1624 = vmatpush.msk.msra.mxu2 %vm640_vm0, %v630_v44  ;;  %1627 = vmatmul.msk.f32.vlgmr.msra.gmra.mxu3 %vm636_vm1, %v633_v40  ;;  %v853_v40 = vld [vmem:[#allocation7 + $0x158] sm:$0xff]  ;;  %v851_v44 = vld [vmem:[#allocation7 + $0x148] sm:$0xff] }
  0xdc   : > { %1625 = vmatmul.msk.f32.vlgmr.msra.gmra.mxu2 %vm636_vm1, %v1623_v39  ;;  %747 = vmatpush.msrb.mxu3 %v710_v46  ;;  %v870_v39 = vld [vmem:[#allocation8 + $0x158] sm:$0xff]  ;;  %v850_v46 = vld [vmem:[#allocation7 + $0x140] sm:$0xff] }
  0xdd   : > { %727 = vmatpush.msrb.mxu2 %v726_v45  ;;  %v867_v45 = vld [vmem:[#allocation8 + $0x140] sm:$0xff] }
  0xde   : > { %748 = vmatpush.msrb.mxu3 %v709_v50  ;;  %v770_v50 = vld [vmem:[#allocation7 + $0x90] sm:$0xff] }
  0xdf   : > { %728 = vmatpush.msrb.mxu2 %v725_v49  ;;  %v787_v49 = vld [vmem:[#allocation8 + $0x90] sm:$0xff]  ;;  %834 = vmatpush.msrb.mxu1 %v770_v50  ;;  %v1104_v50 = vld [vmem:[#allocation10 + $0xc0] sm:$0xff] }
  0xe0   : > { %749 = vmatpush.msrb.mxu3 %v708_v54  ;;  %814 = vmatpush.msrb.mxu0 %v787_v49  ;;  %v769_v54 = vld [vmem:[#allocation7 + $0x88] sm:$0xff] }
  0xe1   : > { %729 = vmatpush.msrb.mxu2 %v724_v53  ;;  %v786_v53 = vld [vmem:[#allocation8 + $0x88] sm:$0xff]  ;;  %835 = vmatpush.msrb.mxu1 %v769_v54  ;;  %v1100_v54 = vld [vmem:[#allocation10 + $0xa0] sm:$0xff] }
  0xe2   : > { %750 = vmatpush.msrb.mxu3 %v707_v58  ;;  %815 = vmatpush.msrb.mxu0 %v786_v53  ;;  %v768_v58 = vld [vmem:[#allocation7 + $0x80] sm:$0xff]  ;;  %v1105_v49 = vld [vmem:[#allocation10 + $0xc8] sm:$0xff] }
  0xe3   : > { %730 = vmatpush.msrb.mxu2 %v723_v57  ;;  %v785_v57 = vld [vmem:[#allocation8 + $0x80] sm:$0xff]  ;;  %836 = vmatpush.msrb.mxu1 %v768_v58  ;;  %v1101_v53 = vld [vmem:[#allocation10 + $0xa8] sm:$0xff]  ;;  %v1073_v58 = vld [vmem:[#allocation10 + $0x70] sm:$0xff] }
  0xe4   : > { %751 = vmatpush.msrb.mxu3 %v706_v62  ;;  %816 = vmatpush.msrb.mxu0 %v785_v57  ;;  %v862_v62 = vld [vmem:[#allocation8 + $0x118] sm:$0xff] }
  0xe5   : > { %731 = vmatpush.msrb.mxu2 %v722_v61  ;;  %v2326_v61 = vld [vmem:[%s556_s20] sm:$0xff]  ;;  %s2025_s20 = scalar_lea.hbm %s2556_s12, 16 }
  0xe6   : > { %752 = vmatpush.msrb.mxu3 %v705_v2  ;;  %817 = vmatmul.f32.vlgmr.msrb.gmra.mxu0 %v2326_v61  ;;  %v860_v2 = vld [vmem:[#allocation8 + $0x108] sm:$0xff]  ;;  %v1099_v57 = vld [vmem:[#allocation10 + $0x98] sm:$0xff]  ;;  %p2027_p4 = scmp.lt.s32.totalorder %s2025_s20, %s2021_s19 }
  0xe7   : > { %732 = vmatpush.msrb.mxu2 %v721_v1  ;;  %v844_v1 = vld [vmem:[#allocation7 + $0x110] sm:$0xff] }
  0xe8   : > { %753 = vmatpush.msrb.mxu3 %v704_v6  ;;  %v1758_v6 = vld [vmem:[#allocation5] ss:$0 sm:$0xff]  ;;  %p2028_p7 = por %p2027_p4, %p2026_p3 }
  0xe9   : > { %733 = vmatpush.msrb.mxu2 %v720_v5  ;;  %v842_v5 = vld [vmem:[#allocation7 + $0x100] sm:$0xff] }
  0xea   : > { %754 = vmatpush.msrb.mxu3 %v703_v10  ;;  %p2029_p8 = pnand %p2028_p7, %p2024_p2 }
  0xeb   : > { %734 = vmatpush.msrb.mxu2 %v719_v9 }
  0xec   : > { %755 = vmatpush.msrb.mxu3 %v702_v14  ;;  %v2346_v14 = vld [vmem:[#allocation14 + $0x60] sm:$0xff] }
  0xed   : > { %735 = vmatpush.msrb.mxu2 %v718_v13  ;;  %v2342_v13 = vld [vmem:[#allocation14 + $0x68] sm:$0xff] }
  0xee   : > { %756 = vmatpush.msrb.mxu3 %v701_v18  ;;  %v2362_v18 = vld [vmem:[#allocation14 + $0x40] sm:$0xff] }
  0xef   : > { %736 = vmatpush.msrb.mxu2 %v717_v17  ;;  %v2358_v17 = vld [vmem:[#allocation14 + $0x48] sm:$0xff] }
  0xf0   : > { %757 = vmatpush.msrb.mxu3 %v700_v20 }
  0xf1   : > { %737 = vmatpush.msrb.mxu2 %v716_v19  ;;  %v2366_v19 = vld [vmem:[#allocation14 + $0x38] sm:$0xff] }
  0xf2   : > { %758 = vmatpush.msrb.mxu3 %v699_v22 }
  0xf3   : > { %738 = vmatpush.msrb.mxu2 %v715_v21  ;;  %v2370_v21 = vld [vmem:[#allocation14 + $0x30] sm:$0xff] }
  0xf4   : > { %759 = vmatpush.msrb.mxu3 %v698_v24  ;;  %v2376_v24 = vld [vmem:[#allocation11] sm:$0xff] }
  0xf5   : > { %739 = vmatpush.msrb.mxu2 %v714_v23 }
  0xf6   : > { %760 = vmatpush.msrb.mxu3 %v697_v26 }
  0xf7   : > { %740 = vmatpush.msrb.mxu2 %v713_v25 }
  0xf8   : > { %761 = vmatpush.msrb.mxu3 %v696_v28  ;;  %v2380_v28 = vld [vmem:[#allocation11 + $0x8] sm:$0xff] }
  0xf9   : > { %741 = vmatpush.msrb.mxu2 %v712_v27 }
  0xfa   : > { %762 = vmatpush.msrb.mxu3 %v695_v30  ;;  %v2388_v30 = vld [vmem:[#allocation14 + $0x20] sm:$0xff] }
  0xfb   : > { %742 = vmatpush.msrb.mxu2 %v711_v29  ;;  %v2384_v29 = vld [vmem:[#allocation14 + $0x28] sm:$0xff] }
  0xfc   : > { %895 = vmatpush.msra.mxu3 %v857_v32  ;;  %743 = vmatmul.f32.vlgmr.msrb.gmra.mxu2 %v2326_v61  ;;  %v2394_v32 = vld [vmem:[#allocation14 + $0x10] sm:$0xff] }
  0xfd   : > { %875 = vmatpush.msra.mxu2 %v874_v31  ;;  %v2390_v31 = vld [vmem:[#allocation14 + $0x18] sm:$0xff] }
  0xfe   : > { %896 = vmatpush.msra.mxu3 %v856_v34  ;;  %v2404_v34 = vld [vmem:[#allocation14] sm:$0xff] }
  0xff   : > { %876 = vmatpush.msra.mxu2 %v873_v33  ;;  %v2400_v33 = vld [vmem:[#allocation14 + $0x8] sm:$0xff] }
 0x100   : > { %897 = vmatpush.msra.mxu3 %v855_v36  ;;  %v1110_v36 = vld [vmem:[#allocation10 + $0xf0] sm:$0xff] }
 0x101   : > { %877 = vmatpush.msra.mxu2 %v872_v35  ;;  %v1111_v35 = vld [vmem:[#allocation10 + $0xf8] sm:$0xff] }
 0x102   : > { %898 = vmatpush.msra.mxu3 %v854_v38 }
 0x103   : > { %878 = vmatpush.msra.mxu2 %v871_v37 }
 0x104   : > { %899 = vmatpush.msra.mxu3 %v853_v40 }
 0x105   : > { %879 = vmatpush.msra.mxu2 %v870_v39 }
 0x106   : > { %900 = vmatpush.msra.mxu3 %v852_v42 }
 0x107   : > { %880 = vmatpush.msra.mxu2 %v869_v41 }
 0x108   : > { %901 = vmatpush.msra.mxu3 %v851_v44 }
 0x109   : > { %881 = vmatpush.msra.mxu2 %v868_v43 }
 0x10a   : > { %902 = vmatpush.msra.mxu3 %v850_v46  ;;  %v1108_v46 = vld [vmem:[#allocation10 + $0xe0] sm:$0xff] }
 0x10b   : > { %882 = vmatpush.msra.mxu2 %v867_v45  ;;  %v1109_v45 = vld [vmem:[#allocation10 + $0xe8] sm:$0xff] }
 0x10c   : > { %903 = vmatpush.msra.mxu3 %v849_v48  ;;  %v1106_v48 = vld [vmem:[#allocation10 + $0xd0] sm:$0xff] }
 0x10d   : > { %883 = vmatpush.msra.mxu2 %v866_v47  ;;  %v1107_v47 = vld [vmem:[#allocation10 + $0xd8] sm:$0xff] }
 0x10e   : > { %904 = vmatpush.msra.mxu3 %v848_v52  ;;  %v1102_v52 = vld [vmem:[#allocation10 + $0xb0] sm:$0xff] }
 0x10f   : > { %884 = vmatpush.msra.mxu2 %v865_v51  ;;  %v1103_v51 = vld [vmem:[#allocation10 + $0xb8] sm:$0xff] }
 0x110   : > { %905 = vmatpush.msra.mxu3 %v847_v56  ;;  %v1128_v56 = vld [vmem:[#allocation10 + $0x178] sm:$0xff] }
 0x111   : > { %885 = vmatpush.msra.mxu2 %v864_v55  ;;  %v1074_v55 = vld [vmem:[#allocation10 + $0x78] sm:$0xff]  ;;  %1129 = vmatpush.msra.mxu1 %v1128_v56  ;;  %v1291_v56 = vld [vmem:[#allocation13 + $0x40] sm:$0xff] }
 0x112   : > { %906 = vmatpush.msra.mxu3 %v846_v60  ;;  %v1098_v60 = vld [vmem:[#allocation10 + $0x90] sm:$0xff] }
 0x113   : > { %886 = vmatpush.msra.mxu2 %v863_v59  ;;  %v1127_v59 = vld [vmem:[#allocation10 + $0x170] sm:$0xff] }
 0x114   : > { %907 = vmatpush.msra.mxu3 %v845_v63  ;;  %1130 = vmatpush.msra.mxu1 %v1127_v59  ;;  %v1126_v63 = vld [vmem:[#allocation10 + $0x168] sm:$0xff] }
 0x115   : > { %887 = vmatpush.msra.mxu2 %v862_v62  ;;  %v1072_v62 = vld [vmem:[#allocation10 + $0x68] sm:$0xff] }
 0x116   : > { %908 = vmatpush.msra.mxu3 %v844_v1  ;;  %1131 = vmatpush.msra.mxu1 %v1126_v63  ;;  %v1071_v1 = vld [vmem:[#allocation10 + $0x60] sm:$0xff]  ;;  %v1061_v63 = vld [vmem:[#allocation10 + $0x10] sm:$0xff] }
 0x117   : > { %888 = vmatpush.msra.mxu2 %v861_v0  ;;  %v1097_v0 = vld [vmem:[#allocation10 + $0x88] sm:$0xff] }
 0x118   : > { %909 = vmatpush.msra.mxu3 %v843_v3  ;;  %v1096_v3 = vld [vmem:[#allocation10 + $0x80] sm:$0xff] }
 0x119   : > { %889 = vmatpush.msra.mxu2 %v860_v2  ;;  %v1125_v2 = vld [vmem:[#allocation10 + $0x160] sm:$0xff] }
 0x11a   : > { %910 = vmatpush.msra.mxu3 %v842_v5  ;;  %1132 = vmatpush.msra.mxu1 %v1125_v2  ;;  %v1124_v5 = vld [vmem:[#allocation10 + $0x158] sm:$0xff] }
 0x11b   : > { %890 = vmatpush.msra.mxu2 %v859_v4  ;;  %v1070_v4 = vld [vmem:[#allocation10 + $0x58] sm:$0xff] }
 0x11c   : > { %891 = vmatmul.f32.vlgmr.msra.gmra.mxu2 %v2326_v61  ;;  %1133 = vmatpush.msra.mxu1 %v1124_v5  ;;  %v1114_v5 = vld [vmem:[#allocation10 + $0x108] sm:$0xff] }
 0x11d   : > { %983 = vmatpush.msrb.mxu2 %v2336_v11 }
 0x11f   : > { %984 = vmatpush.msrb.mxu2 %v2338_v12 }
 0x121   : > { %985 = vmatpush.msrb.mxu2 %v2342_v13 }
 0x123   : > { %986 = vmatpush.msrb.mxu2 %v2346_v14 }
 0x125   : > { %987 = vmatpush.msrb.mxu2 %v2350_v15 }
 0x127   : > { %988 = vmatpush.msrb.mxu2 %v2354_v16 }
 0x129   : > { %989 = vmatpush.msrb.mxu2 %v2358_v17 }
 0x12b   : > { %990 = vmatpush.msrb.mxu2 %v2362_v18 }
 0x12d   : > { %991 = vmatpush.msrb.mxu2 %v2366_v19 }
 0x12f   : > { %992 = vmatpush.msrb.mxu2 %v2370_v21 }
 0x131   : > { %993 = vmatpush.msrb.mxu2 %v2384_v29 }
 0x133   : > { %994 = vmatpush.msrb.mxu2 %v2388_v30 }
 0x135   : > { %995 = vmatpush.msrb.mxu2 %v2390_v31 }
 0x137   : > { %996 = vmatpush.msrb.mxu2 %v2394_v32 }
 0x139   : > { %997 = vmatpush.msrb.mxu2 %v2400_v33 }
 0x13b   : > { %998 = vmatpush.msrb.mxu2 %v2404_v34 }
 0x13d   : > { %1237 = vmatpush.msra.mxu2 %v2336_v11 }
 0x13f   : > { %1238 = vmatpush.msra.mxu2 %v2338_v12 }
 0x141   : > { %1239 = vmatpush.msra.mxu2 %v2342_v13 }
 0x143   : > { %1240 = vmatpush.msra.mxu2 %v2346_v14 }
 0x145   : > { %1241 = vmatpush.msra.mxu2 %v2350_v15 }
 0x147   : > { %1242 = vmatpush.msra.mxu2 %v2354_v16 }
 0x149   : > { %1243 = vmatpush.msra.mxu2 %v2358_v17 }
 0x14b   : > { %1244 = vmatpush.msra.mxu2 %v2362_v18 }
 0x14d   : > { %1245 = vmatpush.msra.mxu2 %v2366_v19 }
 0x14f   : > { %1246 = vmatpush.msra.mxu2 %v2370_v21 }
 0x151   : > { %1247 = vmatpush.msra.mxu2 %v2384_v29 }
 0x153   : > { %1248 = vmatpush.msra.mxu2 %v2388_v30 }
 0x155   : > { %1249 = vmatpush.msra.mxu2 %v2390_v31 }
 0x157   : > { %1250 = vmatpush.msra.mxu2 %v2394_v32 }
 0x159   : > { %1251 = vmatpush.msra.mxu2 %v2400_v33 }
 0x15b   : > { %1252 = vmatpush.msra.mxu2 %v2404_v34 }
 0x15e   : > { %v687_v8 = vpop.f32.mrf.mxu3 }
 0x15f   : > { %v661_v7 = vpop.f32.mrf.mxu2 }
 0x160   : > { %v688_v9 = vadd.f32 %v687_v8, %v661_v7  ;;  %v1069_v7 = vld [vmem:[#allocation10 + $0x50] sm:$0xff] }
 0x161   : > { %v1123_v8 = vld [vmem:[#allocation10 + $0x150] sm:$0xff] }
 0x162   : > { %v2331_v10 = vadd.f32 %v1758_v6, %v688_v9  ;;  %v1298_v6 = vld [vmem:[#allocation13 + $0x78] sm:$0xff]  ;;  %v1297_v9 = vld [vmem:[#allocation13 + $0x70] sm:$0xff]  ;;  %1134 = vmatpush.msra.mxu1 %v1123_v8  ;;  %v1288_v8 = vld [vmem:[#allocation13 + $0x28] sm:$0xff] }
 0x163   : > { %v818_v37 = vpop.f32.mrf.mxu0 }
 0x164   : > { %763 = vmatmul.f32.vlgmr.msrb.gmra.mxu3 %v2331_v10  ;;  %837 = vmatmul.f32.vlgmr.msrb.gmra.mxu1 %v2331_v10 }
 0x165   : > { %1010 = vmatpush.msrb.mxu3 %v2336_v11 }
 0x167   : > { %1011 = vmatpush.msrb.mxu3 %v2338_v12 }
 0x169   : > { %1012 = vmatpush.msrb.mxu3 %v2342_v13 }
 0x16b   : > { %1013 = vmatpush.msrb.mxu3 %v2346_v14 }
 0x16c   : > { %911 = vmatmul.f32.vlgmr.msra.gmra.mxu3 %v2331_v10 }
 0x16d   : > { %1014 = vmatpush.msrb.mxu3 %v2350_v15 }
 0x16f   : > { %1015 = vmatpush.msrb.mxu3 %v2354_v16 }
 0x171   : > { %1016 = vmatpush.msrb.mxu3 %v2358_v17 }
 0x173   : > { %1017 = vmatpush.msrb.mxu3 %v2362_v18 }
 0x175   : > { %1018 = vmatpush.msrb.mxu3 %v2366_v19 }
 0x177   : > { %1019 = vmatpush.msrb.mxu3 %v2370_v21 }
 0x179   : > { %1020 = vmatpush.msrb.mxu3 %v2384_v29 }
 0x17b   : > { %1021 = vmatpush.msrb.mxu3 %v2388_v30 }
 0x17d   : > { %1022 = vmatpush.msrb.mxu3 %v2390_v31 }
 0x17f   : > { %v744_v20 = vpop.f32.mrf.mxu2  ;;  %1023 = vmatpush.msrb.mxu3 %v2394_v32 }
 0x181   : > { %1024 = vmatpush.msrb.mxu3 %v2400_v33 }
 0x183   : > { %1025 = vmatpush.msrb.mxu3 %v2404_v34 }
 0x185   : > { %1169 = vmatpush.msra.mxu3 %v1111_v35  ;;  %v1295_v35 = vld [vmem:[#allocation13 + $0x60] sm:$0xff] }
 0x187   : > { %1170 = vmatpush.msra.mxu3 %v1110_v36 }
 0x189   : > { %1171 = vmatpush.msra.mxu3 %v1109_v45  ;;  %v1119_v45 = vld [vmem:[#allocation10 + $0x130] sm:$0xff] }
 0x18b   : > { %1172 = vmatpush.msra.mxu3 %v1108_v46  ;;  %v1293_v46 = vld [vmem:[#allocation13 + $0x50] sm:$0xff] }
 0x18d   : > { %1173 = vmatpush.msra.mxu3 %v1107_v47  ;;  %v1064_v47 = vld [vmem:[#allocation10 + $0x28] sm:$0xff] }
 0x18f   : > { %1174 = vmatpush.msra.mxu3 %v1106_v48  ;;  %v1118_v48 = vld [vmem:[#allocation10 + $0x128] sm:$0xff] }
 0x191   : > { %1175 = vmatpush.msra.mxu3 %v1105_v49 }
 0x193   : > { %1176 = vmatpush.msra.mxu3 %v1104_v50 }
 0x195   : > { %1177 = vmatpush.msra.mxu3 %v1103_v51  ;;  %v1292_v51 = vld [vmem:[#allocation13 + $0x48] sm:$0xff] }
 0x197   : > { %1178 = vmatpush.msra.mxu3 %v1102_v52  ;;  %v1063_v52 = vld [vmem:[#allocation10 + $0x20] sm:$0xff] }
 0x199   : > { %1179 = vmatpush.msra.mxu3 %v1101_v53  ;;  %v1117_v53 = vld [vmem:[#allocation10 + $0x120] sm:$0xff] }
 0x19b   : > { %1180 = vmatpush.msra.mxu3 %v1100_v54 }
 0x19d   : > { %1181 = vmatpush.msra.mxu3 %v1099_v57  ;;  %v1062_v57 = vld [vmem:[#allocation10 + $0x18] sm:$0xff] }
 0x19f   : > { %v892_v25 = vpop.f32.mrf.mxu2  ;;  %1182 = vmatpush.msra.mxu3 %v1098_v60 }
 0x1a1   : > { %1183 = vmatpush.msra.mxu3 %v1097_v0  ;;  %v1115_v0 = vld [vmem:[#allocation10 + $0x110] sm:$0xff] }
 0x1a3   : > { %1184 = vmatpush.msra.mxu3 %v1096_v3  ;;  %v1289_v3 = vld [vmem:[#allocation13 + $0x30] sm:$0xff] }
 0x1e1   : > { %v838_v39 = vpop.f32.mrf.mxu1 }
 0x1e2   : > { %v839_v40 = vadd.f32 %v838_v39, %v818_v37  ;;  %v1120_v39 = vld [vmem:[#allocation10 + $0x138] sm:$0xff] }
 0x1e7   : > { %v764_v22 = vpop.f32.mrf.mxu3 }
 0x1e8   : > { %v765_v23 = vadd.f32 %v764_v22, %v744_v20  ;;  %v1068_v20 = vld [vmem:[#allocation10 + $0x48] sm:$0xff] }
 0x1e9   : > { %v1122_v22 = vld [vmem:[#allocation10 + $0x148] sm:$0xff] }
 0x1ea   : > { %935 = vmatpush.msra.mxu0 %v765_v23  ;;  %v1296_v23 = vld [vmem:[#allocation13 + $0x68] sm:$0xff]  ;;  %1135 = vmatpush.msra.mxu1 %v1122_v22 }
 0x1eb   : > { %1628 = vmatmul.msk.f32.vlgmr.msra.gmra.mxu0 %vm916_vm2, %v2376_v24 }
 0x1ef   : > { %v912_v26 = vpop.f32.mrf.mxu3 }
 0x1f0   : > { %v913_v27 = vadd.f32 %v912_v26, %v892_v25  ;;  %v1067_v26 = vld [vmem:[#allocation10 + $0x40] sm:$0xff] }
 0x1f2   : > { %961 = vmatpush.msrb.mxu0 %v913_v27  ;;  %v1121_v27 = vld [vmem:[#allocation10 + $0x140] sm:$0xff] }
 0x1f3   : > { %1629 = vmatmul.msk.f32.vlgmr.msrb.gmra.mxu0 %vm916_vm2, %v2380_v28  ;;  %1136 = vmatpush.msra.mxu1 %v1121_v27  ;;  %v1286_v27 = vld [vmem:[#allocation13 + $0x18] sm:$0xff] }
 0x1f4   : > { %1075 = vmatpush.msra.mxu0 %v1074_v55 }
 0x1f5   : > { %1137 = vmatpush.msra.mxu1 %v1120_v39 }
 0x1f6   : > { %1076 = vmatpush.msra.mxu0 %v1073_v58  ;;  %v1116_v58 = vld [vmem:[#allocation10 + $0x118] sm:$0xff] }
 0x1f7   : > { %1138 = vmatpush.msra.mxu1 %v1119_v45 }
 0x1f8   : > { %1077 = vmatpush.msra.mxu0 %v1072_v62  ;;  %v1290_v62 = vld [vmem:[#allocation13 + $0x38] sm:$0xff] }
 0x1f9   : > { %1139 = vmatpush.msra.mxu1 %v1118_v48 }
 0x1fa   : > { %1078 = vmatpush.msra.mxu0 %v1071_v1 }
 0x1fb   : > { %1140 = vmatpush.msra.mxu1 %v1117_v53 }
 0x1fc   : > { %1079 = vmatpush.msra.mxu0 %v1070_v4  ;;  %v1060_v4 = vld [vmem:[#allocation10 + $0x8] sm:$0xff] }
 0x1fd   : > { %1141 = vmatpush.msra.mxu1 %v1116_v58 }
 0x1fe   : > { %1080 = vmatpush.msra.mxu0 %v1069_v7 }
 0x1ff   : > { %1142 = vmatpush.msra.mxu1 %v1115_v0 }
 0x200   : > { %1081 = vmatpush.msra.mxu0 %v1068_v20  ;;  %v1113_v20 = vld [vmem:[#allocation10 + $0x100] sm:$0xff] }
 0x201   : > { %1143 = vmatpush.msra.mxu1 %v1114_v5 }
 0x202   : > { %1082 = vmatpush.msra.mxu0 %v1067_v26 }
 0x203   : > { %1144 = vmatpush.msra.mxu1 %v1113_v20 }
 0x205   : > { %1210 = vmatpush.msrb.mxu1 %v2336_v11 }
 0x207   : > { %1211 = vmatpush.msrb.mxu1 %v2338_v12 }
 0x209   : > { %1212 = vmatpush.msrb.mxu1 %v2342_v13 }
 0x20b   : > { %1213 = vmatpush.msrb.mxu1 %v2346_v14 }
 0x20d   : > { %1214 = vmatpush.msrb.mxu1 %v2350_v15 }
 0x20f   : > { %1215 = vmatpush.msrb.mxu1 %v2354_v16 }
 0x211   : > { %1216 = vmatpush.msrb.mxu1 %v2358_v17 }
 0x213   : > { %1217 = vmatpush.msrb.mxu1 %v2362_v18 }
 0x215   : > { %1218 = vmatpush.msrb.mxu1 %v2366_v19 }
 0x217   : > { %1219 = vmatpush.msrb.mxu1 %v2370_v21 }
 0x219   : > { %1220 = vmatpush.msrb.mxu1 %v2384_v29 }
 0x21b   : > { %1221 = vmatpush.msrb.mxu1 %v2388_v30 }
 0x21d   : > { %1222 = vmatpush.msrb.mxu1 %v2390_v31 }
 0x21f   : > { %1223 = vmatpush.msrb.mxu1 %v2394_v32 }
 0x221   : > { %1224 = vmatpush.msrb.mxu1 %v2400_v33 }
 0x223   : > { %1225 = vmatpush.msrb.mxu1 %v2404_v34 }
 0x268   : > { %v937_v38 = vpop.f32.mrf.mxu0 }
 0x269   : > { %v940_v41 = vadd.f32 %v937_v38, %v839_v40  ;;  %v1066_v38 = vld [vmem:[#allocation10 + $0x38] sm:$0xff]  ;;  %v1294_v40 = vld [vmem:[#allocation13 + $0x58] sm:$0xff] }
 0x26a   : > { %1083 = vmatpush.msra.mxu0 %v1066_v38 }
 0x270   : > { %v963_v42 = vpop.f32.mrf.mxu0 }
 0x271   : > { %v2423_v43 = vadd.f32 %v963_v42, %v940_v41 }
 0x273   : > { %v1009_v44 = vmul.f32 %v2423_v43, %v2423_v43  ;;  %999 = vmatmul.f32.vlgmr.msrb.gmra.mxu2 %v2423_v43 }
 0x274   : > { %1383 = vmatpush.msrb.mxu2 %v2336_v11 }
 0x275   : > { %1026 = vmatmul.f32.vlgmr.msrb.gmra.mxu3 %v1009_v44  ;;  %v1065_v44 = vld [vmem:[#allocation10 + $0x30] sm:$0xff] }
 0x276   : > { %1384 = vmatpush.msrb.mxu2 %v2338_v12  ;;  %1336 = vmatpush.msrb.mxu3 %v1298_v6 }
 0x277   : > { %1084 = vmatpush.msra.mxu0 %v1065_v44  ;;  %v2461_v44 = vld [vmem:[%s2555_s11] sm:$0x3f] }
 0x278   : > { %1385 = vmatpush.msrb.mxu2 %v2342_v13  ;;  %1337 = vmatpush.msrb.mxu3 %v1297_v9  ;;  %v1059_v9 = vld [vmem:[#allocation10] sm:$0xff] }
 0x279   : > { %1085 = vmatpush.msra.mxu0 %v1064_v47 }
 0x27a   : > { %1386 = vmatpush.msrb.mxu2 %v2346_v14  ;;  %1338 = vmatpush.msrb.mxu3 %v1296_v23  ;;  %v1287_v23 = vld [vmem:[#allocation13 + $0x20] sm:$0xff] }
 0x27b   : > { %1086 = vmatpush.msra.mxu0 %v1063_v52 }
 0x27c   : > { %1387 = vmatpush.msrb.mxu2 %v2350_v15  ;;  %1339 = vmatpush.msrb.mxu3 %v1295_v35  ;;  %v1285_v35 = vld [vmem:[#allocation13 + $0x10] sm:$0xff] }
 0x27d   : > { %1087 = vmatpush.msra.mxu0 %v1062_v57 }
 0x27e   : > { %1388 = vmatpush.msrb.mxu2 %v2354_v16  ;;  %1340 = vmatpush.msrb.mxu3 %v1294_v40 }
 0x27f   : > { %1088 = vmatpush.msra.mxu0 %v1061_v63 }
 0x280   : > { %1389 = vmatpush.msrb.mxu2 %v2358_v17  ;;  %1341 = vmatpush.msrb.mxu3 %v1293_v46 }
 0x281   : > { %1089 = vmatpush.msra.mxu0 %v1060_v4 }
 0x282   : > { %1390 = vmatpush.msrb.mxu2 %v2362_v18  ;;  %1342 = vmatpush.msrb.mxu3 %v1292_v51 }
 0x283   : > { %1090 = vmatpush.msra.mxu0 %v1059_v9 }
 0x284   : > { %1391 = vmatpush.msrb.mxu2 %v2366_v19  ;;  %1343 = vmatpush.msrb.mxu3 %v1291_v56 }
 0x286   : > { %1392 = vmatpush.msrb.mxu2 %v2370_v21  ;;  %1344 = vmatpush.msrb.mxu3 %v1290_v62 }
 0x288   : > { %1393 = vmatpush.msrb.mxu2 %v2384_v29  ;;  %1345 = vmatpush.msrb.mxu3 %v1289_v3 }
 0x28a   : > { %1394 = vmatpush.msrb.mxu2 %v2388_v30  ;;  %1346 = vmatpush.msrb.mxu3 %v1288_v8 }
 0x28c   : > { %1395 = vmatpush.msrb.mxu2 %v2390_v31  ;;  %1347 = vmatpush.msrb.mxu3 %v1287_v23 }
 0x28e   : > { %1396 = vmatpush.msrb.mxu2 %v2394_v32  ;;  %1348 = vmatpush.msrb.mxu3 %v1286_v27 }
 0x290   : > { %1397 = vmatpush.msrb.mxu2 %v2400_v33  ;;  %1349 = vmatpush.msrb.mxu3 %v1285_v35 }
 0x292   : > { %1398 = vmatpush.msrb.mxu2 %v2404_v34 }
 0x2f6   : > { %v1000_v25 = vpop.f32.mrf.mxu2 }
 0x2f7   : > { %v1003_v36 = vrot.slane %v1000_v25, 4 }
 0x2f8   : > { %v1027_v37 = vpop.f32.mrf.mxu3 }
 0x2f9   : > { %v1004_v41 = vadd.f32 %v1003_v36, %v1000_v25  ;;  %v1030_v42 = vrot.slane %v1027_v37, 4  ;;  %v1284_v36 = vld [vmem:[#allocation13 + $0x8] sm:$0xff] }
 0x2fa   : > { %1350 = vmatpush.msrb.mxu3 %v1284_v36 }
 0x2fb   : > { %v1005_v49 = vrot.slane %v1004_v41, 2  ;;  %v1031_v50 = vadd.f32 %v1030_v42, %v1027_v37  ;;  %v1283_v37 = vld [vmem:[#allocation13] sm:$0xff] }
 0x2fc   : > { %1351 = vmatpush.msrb.mxu3 %v1283_v37 }
 0x2fd   : > { %v1006_v54 = vadd.f32 %v1005_v49, %v1004_v41  ;;  %v1032_v55 = vrot.slane %v1031_v50, 2 }
 0x2ff   : > { %v1007_v59 = vrot.slane %v1006_v54, 1  ;;  %v1033_v60 = vadd.f32 %v1032_v55, %v1031_v50  ;;  %v1054_v50 = vperm.slane %v2461_v44, 1 }
 0x301   : > { %v2445_v1 = vadd.f32 %v1007_v59, %v1006_v54  ;;  %v1034_v2 = vrot.slane %v1033_v60, 1 }
 0x303   : > { %v1036_v6 = vmul.f32 %v2445_v1, %v2445_v1  ;;  %v1035_v7 = vadd.f32 %v1034_v2, %v1033_v60  ;;  %v1039_v48 = vsub.f32 %v2423_v43, %v2445_v1 }
 0x305   : > { %v1037_v22 = vsub.f32 %v1035_v7, %v1036_v6 }
 0x307   : > { %v1038_v25 = vmax.f32 %v1037_v22, 0.0 }
 0x309   : > { %v1040_v26 = vadd.f32 1e-05, %v1038_v25 }
 0x30b   : > { %1759 = vrsqrt.f32 %v1040_v26  ;;  %vm1047_vm4 = vweird.f32 %v1040_v26 }
 0x311   : > { %v1760_v38 = vpop.eup %1759 }
 0x312   : > { %v1042_v39 = vmul.f32 %v1760_v38, %v1040_v26  ;;  %vm1048_vm3 = vweird.f32 %v1760_v38 }
 0x313   : > { %vm1049_vm5 = vmor %vm1047_vm4, %vm1048_vm3 }
 0x314   : > { %v1043_v40 = vmul.f32 %v1760_v38, %v1042_v39 }
 0x316   : > { %v1044_v41 = vmul.f32 0.5, %v1043_v40 }
 0x318   : > { %v1045_v42 = vsub.f32 1.5, %v1044_v41 }
 0x31a   : > { %v1046_v45 = vmul.f32 %v1760_v38, %v1045_v42 }
 0x31c   : > { %v1050_v46 = vsel %vm1049_vm5, %v1760_v38, %v1046_v45 }
 0x31d   : > { %v1051_v47 = vmul.f32 %v1050_v46, %v2461_v44 }
 0x31f   : > { %v1052_v49 = vperm.slane %v1051_v47, 0 }
 0x321   : > { %v1053_v51 = vmul.f32 %v1052_v49, %v1039_v48 }
 0x323   : > { %v1055_v52 = vadd.f32 %v1054_v50, %v1053_v51 }
 0x325   : > { %vm1056_vm6 = vcmp.ge.f32.partialorder %v1055_v52, 0.0  ;;  %v1057_v53 = vmul.f32 0.01, %v1055_v52 }
 0x327   : > { %v1058_v54 = vsel %vm1056_vm6, %v1055_v52, %v1057_v53 }
 0x328   : > { %1091 = vmatmul.f32.vlgmr.msra.gmra.mxu0 %v1058_v54  ;;  %1145 = vmatmul.f32.vlgmr.msra.gmra.mxu1 %v1058_v54 }
 0x329   : > { %1185 = vmatmul.f32.vlgmr.msra.gmra.mxu3 %v1058_v54  ;;  %1356 = vmatpush.msra.mxu1 %v2336_v11 }
 0x32b   : > { %1357 = vmatpush.msra.mxu1 %v2338_v12  ;;  %v1315_v12 = vld [vmem:[#allocation13 + $0xf8] sm:$0xff] }
 0x32d   : > { %1358 = vmatpush.msra.mxu1 %v2342_v13  ;;  %v1314_v13 = vld [vmem:[#allocation13 + $0xf0] sm:$0xff] }
 0x32f   : > { %1359 = vmatpush.msra.mxu1 %v2346_v14  ;;  %v1313_v14 = vld [vmem:[#allocation13 + $0xe8] sm:$0xff] }
 0x331   : > { %1352 = vmatmul.f32.vlgmr.msrb.gmra.mxu3 %v2331_v10  ;;  %1360 = vmatpush.msra.mxu1 %v2350_v15  ;;  %v1312_v15 = vld [vmem:[#allocation13 + $0xe0] sm:$0xff] }
 0x333   : > { %1361 = vmatpush.msra.mxu1 %v2354_v16  ;;  %v1311_v16 = vld [vmem:[#allocation13 + $0xd8] sm:$0xff] }
 0x335   : > { %1362 = vmatpush.msra.mxu1 %v2358_v17  ;;  %v1310_v17 = vld [vmem:[#allocation13 + $0xd0] sm:$0xff] }
 0x337   : > { %1363 = vmatpush.msra.mxu1 %v2362_v18  ;;  %v1309_v18 = vld [vmem:[#allocation13 + $0xc8] sm:$0xff] }
 0x339   : > { %1364 = vmatpush.msra.mxu1 %v2366_v19  ;;  %v1308_v19 = vld [vmem:[#allocation13 + $0xc0] sm:$0xff] }
 0x33b   : > { %1365 = vmatpush.msra.mxu1 %v2370_v21  ;;  %v1307_v21 = vld [vmem:[#allocation13 + $0xb8] sm:$0xff] }
 0x33d   : > { %1366 = vmatpush.msra.mxu1 %v2384_v29  ;;  %v1305_v29 = vld [vmem:[#allocation13 + $0xa8] sm:$0xff] }
 0x33f   : > { %1367 = vmatpush.msra.mxu1 %v2388_v30  ;;  %v1304_v30 = vld [vmem:[#allocation13 + $0xa0] sm:$0xff] }
 0x341   : > { %1368 = vmatpush.msra.mxu1 %v2390_v31  ;;  %v1303_v31 = vld [vmem:[#allocation13 + $0x98] sm:$0xff] }
 0x343   : > { %1369 = vmatpush.msra.mxu1 %v2394_v32  ;;  %v1302_v32 = vld [vmem:[#allocation13 + $0x90] sm:$0xff] }
 0x345   : > { %1370 = vmatpush.msra.mxu1 %v2400_v33  ;;  %v1301_v33 = vld [vmem:[#allocation13 + $0x88] sm:$0xff] }
 0x347   : > { %1371 = vmatpush.msra.mxu1 %v2404_v34 }
 0x3a5   : > { %v1092_v10 = vpop.f32.mrf.mxu0  ;;  %v1146_v11 = vpop.f32.mrf.mxu1 }
 0x3a6   : > { %1164 = vmatpush.msrb.mxu0 %v1092_v10 }
 0x3a7   : > { %1630 = vmatmul.msk.f32.vlgmr.msrb.gmra.mxu0 %vm916_vm2, %v2376_v24  ;;  %v1306_v24 = vld [vmem:[#allocation13 + $0xb0] sm:$0xff] }
 0x3a8   : > { %1204 = vmatpush.msra.mxu0 %v1146_v11 }
 0x3aa   : > { %1316 = vmatpush.msrb.mxu0 %v1315_v12 }
 0x3ac   : > { %1317 = vmatpush.msrb.mxu0 %v1314_v13  ;;  %v1186_v43 = vpop.f32.mrf.mxu3 }
 0x3ae   : > { %1318 = vmatpush.msrb.mxu0 %v1313_v14 }
 0x3af   : > { %1631 = vmatmul.msk.f32.vlgmr.msra.gmra.mxu0 %vm916_vm2, %v2380_v28  ;;  %v1300_v28 = vld [vmem:[#allocation13 + $0x80] sm:$0xff] }
 0x3b0   : > { %1319 = vmatpush.msrb.mxu0 %v1312_v15 }
 0x3b2   : > { %1320 = vmatpush.msrb.mxu0 %v1311_v16 }
 0x3b4   : > { %1321 = vmatpush.msrb.mxu0 %v1310_v17  ;;  %v1353_v59 = vpop.f32.mrf.mxu3 }
 0x3b6   : > { %1322 = vmatpush.msrb.mxu0 %v1309_v18 }
 0x3b8   : > { %1323 = vmatpush.msrb.mxu0 %v1308_v19 }
 0x3ba   : > { %1324 = vmatpush.msrb.mxu0 %v1307_v21 }
 0x3bc   : > { %1325 = vmatpush.msrb.mxu0 %v1306_v24 }
 0x3be   : > { %1326 = vmatpush.msrb.mxu0 %v1305_v29 }
 0x3c0   : > { %1327 = vmatpush.msrb.mxu0 %v1304_v30 }
 0x3c2   : > { %1328 = vmatpush.msrb.mxu0 %v1303_v31 }
 0x3c4   : > { %1329 = vmatpush.msrb.mxu0 %v1302_v32 }
 0x3c6   : > { %1330 = vmatpush.msrb.mxu0 %v1301_v33 }
 0x3c8   : > { %1331 = vmatpush.msrb.mxu0 %v1300_v28 }
 0x3c9   : > { %1332 = vmatmul.f32.vlgmr.msrb.gmra.mxu0 %v2326_v61 }
 0x424   : > { %v1166_v34 = vpop.f32.mrf.mxu0 }
 0x425   : > { %v1187_v55 = vadd.f32 %v1186_v43, %v1166_v34  ;;  %v1281_v43 = vperm.slane %v2461_v44, 3 }
 0x42c   : > { %v1206_v56 = vpop.f32.mrf.mxu0 }
 0x42d   : > { %v2496_v57 = vadd.f32 %v1206_v56, %v1187_v55 }
 0x42f   : > { %v1236_v58 = vmul.f32 %v2496_v57, %v2496_v57  ;;  %1226 = vmatmul.f32.vlgmr.msrb.gmra.mxu1 %v2496_v57 }
 0x431   : > { %1253 = vmatmul.f32.vlgmr.msra.gmra.mxu2 %v1236_v58 }
 0x446   : > { %v1333_v60 = vpop.f32.mrf.mxu0 }
 0x447   : > { %v2501_v62 = vadd.f32 %v1353_v59, %v1333_v60  ;;  %v1427_v59 = vperm.slane %v2461_v44, 5 }
 0x449   : > { %v1382_v63 = vmul.f32 %v2501_v62, %v2501_v62  ;;  %1372 = vmatmul.f32.vlgmr.msra.gmra.mxu1 %v2501_v62 }
 0x44b   : > { %1399 = vmatmul.f32.vlgmr.msrb.gmra.mxu2 %v1382_v63 }
 0x4ac   : > { %v1227_v61 = vpop.f32.mrf.mxu1 }
 0x4ad   : > { %v1230_v0 = vrot.slane %v1227_v61, 4 }
 0x4af   : > { %v1231_v1 = vadd.f32 %v1230_v0, %v1227_v61 }
 0x4b1   : > { %v1232_v2 = vrot.slane %v1231_v1, 2 }
 0x4b3   : > { %v1233_v3 = vadd.f32 %v1232_v2, %v1231_v1 }
 0x4b4   : > { %v1254_v4 = vpop.f32.mrf.mxu2 }
 0x4b5   : > { %v1257_v5 = vrot.slane %v1254_v4, 4  ;;  %v1234_v6 = vrot.slane %v1233_v3, 1 }
 0x4b7   : > { %v1258_v7 = vadd.f32 %v1257_v5, %v1254_v4  ;;  %v1235_v9 = vadd.f32 %v1234_v6, %v1233_v3 }
 0x4b9   : > { %v1259_v8 = vrot.slane %v1258_v7, 2  ;;  %v1263_v23 = vmul.f32 %v1235_v9, %v1235_v9  ;;  %v1266_v28 = vsub.f32 %v2496_v57, %v1235_v9 }
 0x4bb   : > { %v1260_v20 = vadd.f32 %v1259_v8, %v1258_v7 }
 0x4bd   : > { %v1261_v22 = vrot.slane %v1260_v20, 1 }
 0x4bf   : > { %v1262_v25 = vadd.f32 %v1261_v22, %v1260_v20 }
 0x4c1   : > { %v1264_v26 = vsub.f32 %v1262_v25, %v1263_v23 }
 0x4c3   : > { %v1265_v27 = vmax.f32 %v1264_v26, 0.0 }
 0x4c5   : > { %v1267_v37 = vadd.f32 1e-05, %v1265_v27 }
 0x4c6   : > { %v1373_v35 = vpop.f32.mrf.mxu1 }
 0x4c7   : > { %v1376_v36 = vrot.slane %v1373_v35, 4  ;;  %1761 = vrsqrt.f32 %v1267_v37  ;;  %vm1274_vm8 = vweird.f32 %v1267_v37 }
 0x4c9   : > { %v1377_v38 = vadd.f32 %v1376_v36, %v1373_v35 }
 0x4cb   : > { %v1378_v39 = vrot.slane %v1377_v38, 2 }
 0x4cd   : > { %v1379_v40 = vadd.f32 %v1378_v39, %v1377_v38  ;;  %v1762_v47 = vpop.eup %1761 }
 0x4ce   : > { %v1400_v41 = vpop.f32.mrf.mxu2  ;;  %v1269_v51 = vmul.f32 %v1762_v47, %v1267_v37  ;;  %vm1275_vm7 = vweird.f32 %v1762_v47 }
 0x4cf   : > { %v1403_v42 = vrot.slane %v1400_v41, 4  ;;  %v1380_v45 = vrot.slane %v1379_v40, 1  ;;  %vm1276_vm9 = vmor %vm1274_vm8, %vm1275_vm7 }
 0x4d0   : > { %v1270_v10 = vmul.f32 %v1762_v47, %v1269_v51 }
 0x4d1   : > { %v1404_v46 = vadd.f32 %v1403_v42, %v1400_v41  ;;  %v1381_v49 = vadd.f32 %v1380_v45, %v1379_v40 }
 0x4d2   : > { %v1271_v13 = vmul.f32 0.5, %v1270_v10 }
 0x4d3   : > { %v1405_v48 = vrot.slane %v1404_v46, 2  ;;  %v1409_v53 = vmul.f32 %v1381_v49, %v1381_v49  ;;  %v1412_v55 = vsub.f32 %v2501_v62, %v1381_v49 }
 0x4d4   : > { %v1272_v15 = vsub.f32 1.5, %v1271_v13 }
 0x4d5   : > { %v1406_v50 = vadd.f32 %v1405_v48, %v1404_v46 }
 0x4d6   : > { %v1273_v16 = vmul.f32 %v1762_v47, %v1272_v15 }
 0x4d7   : > { %v1407_v52 = vrot.slane %v1406_v50, 1 }
 0x4d8   : > { %v1277_v19 = vsel %vm1276_vm9, %v1762_v47, %v1273_v16 }
 0x4d9   : > { %v1408_v54 = vadd.f32 %v1407_v52, %v1406_v50  ;;  %v1278_v29 = vmul.f32 %v1277_v19, %v2461_v44 }
 0x4db   : > { %v1410_v11 = vsub.f32 %v1408_v54, %v1409_v53  ;;  %v1279_v32 = vperm.slane %v1278_v29, 2 }
 0x4dd   : > { %v1411_v12 = vmax.f32 %v1410_v11, 0.0  ;;  %v1280_v58 = vmul.f32 %v1279_v32, %v1266_v28 }
 0x4df   : > { %v1413_v14 = vadd.f32 1e-05, %v1411_v12  ;;  %v1282_v63 = vadd.f32 %v1281_v43, %v1280_v58 }
 0x4e1   : > { %1763 = vrsqrt.f32 %v1413_v14  ;;  %vm1420_vm11 = vweird.f32 %v1413_v14 }
 0x4e7   : > { %v1764_v17 = vpop.eup %1763 }
 0x4e8   : > { %v1415_v18 = vmul.f32 %v1764_v17, %v1413_v14  ;;  %vm1421_vm10 = vweird.f32 %v1764_v17 }
 0x4e9   : > { %vm1422_vm12 = vmor %vm1420_vm11, %vm1421_vm10 }
 0x4ea   : > { %v1416_v21 = vmul.f32 %v1764_v17, %v1415_v18 }
 0x4ec   : > { %v1417_v24 = vmul.f32 0.5, %v1416_v21 }
 0x4ee   : > { %v1418_v30 = vsub.f32 1.5, %v1417_v24 }
 0x4f0   : > { %v1419_v31 = vmul.f32 %v1764_v17, %v1418_v30 }
 0x4f2   : > { %v1423_v33 = vsel %vm1422_vm12, %v1764_v17, %v1419_v31 }
 0x4f3   : > { %v1424_v34 = vmul.f32 %v1423_v33, %v2461_v44 }
 0x4f5   : > { %v1425_v56 = vperm.slane %v1424_v34, 4 }
 0x4f7   : > { %v1426_v60 = vmul.f32 %v1425_v56, %v1412_v55 }
 0x4f9   : > { %v1428_v61 = vadd.f32 %v1427_v59, %v1426_v60 }
 0x4fb   : > { %v1429_v57 = vadd.f32 %v1428_v61, %v1282_v63 }
 0x4fd   : > { %vm1430_vm13 = vcmp.ge.f32.partialorder %v1429_v57, 0.0  ;;  %v1431_v62 = vmul.f32 0.01, %v1429_v57 }
 0x4ff   : > { %v1432_v0 = vsel %vm1430_vm13, %v1429_v57, %v1431_v62 }
 0x500   : > { %1433 = vst [vmem:[%s548_s8] sm:$0xff] %v1432_v0 }
 0x501   : > { %2032 = shalt.err (!%p2029_p8)
}
 0x502   : > { %1668 = dma.vmem_to_hbm [thread:$0]  (%p2202_p5), %s1448_s16, 128, %s1450_s4, %s1435_s18  }
 0x503 PF: > { %p1715_p9 = scmp.ge.s32.totalorder %s2087_s24, 2  ;;  %s1461_s27 = sand.u32 1, %s2075_s21  }
 0x504   : > { %s1462_s14 = scalar_lea.sflag [#allocation4], %s1461_s27 }
 0x505   : > { %p1696_p10 = pnand %p1715_p9, %p2206_p6 }
 0x507   : > { %p1697_p11 = pneg %p1696_p10 }
 0x509   : > { %2070 = dma.done.wait (%p1697_p11), %s1462_s14, 128  }
 0x50a   : > { %2072 = vsyncadd (%p1697_p11), %s1462_s14, 4294967168  ;;  %s2576_s24 = sld [smem:[#allocation24_spill]]  ;;  %s2579_s21 = smov %s2079_s22 }
 0x50b   : > { %s2577_s15 = sld [smem:[#allocation23_spill]] }
 0x50c   : > { %s2578_s23 = sld [smem:[#allocation25_spill]] }
 0x510   : > { %p27_p12 = scmp.ge.s32.totalorder %s2576_s24, 4  }
 0x511   : > { %s2580_s22 = smov %s2577_s15 }
 0x512   :  { %29 = sbr.rel (!%p27_p12) target bundleno = 12 (0xc), region = 149 }
 0x517   :  { %1468 = vsyncpa [#allocation3], 1 }
 0x518   :  { %1470 = vsyncpa [#allocation3 + $0x1], 1 }
 0x519   :  { %1471 = vsyncpa [#allocation6], 1 }
 0x51a   :  { %1472 = vsyncpa [#allocation9], 1 }
 0x51b   :  { %1473 = vsyncpa [#allocation12], 1 }
 0x51c   :  { %1474 = vsyncpa [#allocation15], 1 }
 0x51d   :  { %1475 = vsyncpa [#allocation4], 1 }
 0x51e   :  { %1477 = vsyncpa [#allocation4 + $0x1], 1 }

</bundles_post_ra>
